<compile_context>
chip_gen: v7x
topology: tpu7x:2x2x1
jax: 0.10.0
libtpu: 0.0.40
codegen_flags: <defaults>
</compile_context>

<pallas_src>
import functools

import jax
import jax.numpy as jnp
from jax.experimental import pallas as pl
from jax.experimental.pallas import tpu as pltpu


# Vocab tile width for the fused decoder/loss kernel.  At real CodeBERT sizes
# (V~50k, H=768) use ~4096 on v5e/v6e and ~2048 on v7x (64 MiB VMEM, double
# buffered weight stream); the toy test uses 128 so the multi-tile online
# logsumexp + padding path is exercised.
_VOCAB_TILE = 128


def _layer_norm(x, g, b):
    mu = jnp.mean(x, axis=-1, keepdims=True)
    var = jnp.mean((x - mu) ** 2, axis=-1, keepdims=True)
    return (x - mu) * jax.lax.rsqrt(var + 1e-5) * g + b


# ---------------------------------------------------------------------------
# Pallas kernel 1: fused CopyTokenDecoder + LabelSmoothing per-token pieces.
# grid = (B, 2 passes, NV vocab tiles); B is "parallel" (megacore on v7x),
# the pass / vocab-tile axes are "arbitrary" reductions over VMEM scratch.
# Output per (b, t): [gathered log-prob at label, sum of log-probs over vocab].
# ---------------------------------------------------------------------------
def _fused_decoder_loss_kernel(
        bias_smem,
        outs_ref, mem_ref, valid_ref, copy_ref, lab_ref,
        wq_ref, wk_ref, wv_ref, bq_ref, bk_ref, bv_ref,
        wo_ref, bo_ref, aln_g_ref, aln_b_ref,
        fc1_ref, fc1b_ref, fc2_ref, fc2b_ref, ffg_ref, ffb_ref,
        dwa_ref, dwb_ref, db_ref,
        vwt_ref,
        out_ref,
        h4_sc, copyc_sc, gen_sc, m_sc, s_sc, glp_sc, slp_sc,
        *, v_real, tv):
    f32 = jnp.float32
    bf16 = jnp.bfloat16
    b = pl.program_id(0)
    pss = pl.program_id(1)      # 0: online-logsumexp pass, 1: loss pass
    vt = pl.program_id(2)       # vocab tile index
    nv = pl.num_programs(2)
    T, H = outs_ref.shape[1], outs_ref.shape[2]
    R = mem_ref.shape[1]
    scaling = float(H) ** -0.5  # num_heads == 1 -> head_dim == H

    # ---- per-batch prefix (attention, gates, feed-forward): runs once per b ----
    @pl.when(jnp.logical_and(pss == 0, vt == 0))
    def _prefix():
        outs_b = outs_ref[0]                          # [T, H] bf16
        mem_b = mem_ref[0]                            # [R, H] bf16
        outs_f = outs_b.astype(f32)

        # q/k/v projections: bf16 operands, f32 accumulation, pre-transposed W.
        q = (jnp.dot(outs_b, wq_ref[...], preferred_element_type=f32)
             + bq_ref[...]) * scaling
        k = jnp.dot(mem_b, wk_ref[...], preferred_element_type=f32) + bk_ref[...]
        vv = jnp.dot(mem_b, wv_ref[...], preferred_element_type=f32) + bv_ref[...]

        # scores: contract over H without materializing k.T
        s = jax.lax.dot_general(q.astype(bf16), k.astype(bf16),
                                (((1,), (1,)), ((), ())),
                                preferred_element_type=f32)          # [T, R]
        s = s + bias_smem[b]                                         # per-batch attn bias
        s = jnp.where(valid_ref[0] > 0.5, s, jnp.float32(-1e30))     # key padding mask
        s = s - jnp.max(s, axis=-1, keepdims=True)
        e = jnp.exp(s)
        aw = e * pl.reciprocal(jnp.sum(e, axis=-1, keepdims=True), approx=True)

        ctx = jnp.dot(aw.astype(bf16), vv.astype(bf16), preferred_element_type=f32)
        attn = jnp.dot(ctx.astype(bf16), wo_ref[...],
                       preferred_element_type=f32) + bo_ref[...]

        attn_norm = _layer_norm(attn, aln_g_ref[...], aln_b_ref[...])
        # diverter: concat([outs, attn_norm]) @ W.T == outs @ Wa + attn_norm @ Wb
        gl = (jnp.dot(outs_f, dwa_ref[...], preferred_element_type=f32)
              + jnp.dot(attn_norm, dwb_ref[...], preferred_element_type=f32)
              + db_ref[...])                                         # [T, 2]
        gl = gl - jnp.max(gl, axis=-1, keepdims=True)
        eg = jnp.exp(gl)
        gates = eg * pl.reciprocal(jnp.sum(eg, axis=-1, keepdims=True), approx=True)
        gen_sc[...] = gates[:, 0:1]                                  # gen gate
        copyc_sc[...] = gates[:, 1:2] * aw                           # copy_gate * alignment

        h = _layer_norm(outs_f + attn, aln_g_ref[...], aln_b_ref[...])
        h2 = jnp.maximum(jnp.dot(h.astype(bf16), fc1_ref[...],
                                 preferred_element_type=f32) + fc1b_ref[...], 0.0)
        h3 = jnp.dot(h2.astype(bf16), fc2_ref[...],
                     preferred_element_type=f32) + fc2b_ref[...]
        h4_sc[...] = _layer_norm(h3, ffg_ref[...], ffb_ref[...])

        m_sc[...] = jnp.full_like(m_sc, -1e30)
        s_sc[...] = jnp.zeros_like(s_sc)
        glp_sc[...] = jnp.zeros_like(glp_sc)
        slp_sc[...] = jnp.zeros_like(slp_sc)

    # ---- streamed vocab tile: logits = h4 @ W_vocab_tile (bf16 MXU, f32 acc) ----
    logits = jnp.dot(h4_sc[...].astype(bf16), vwt_ref[...],
                     preferred_element_type=f32)                     # [T, TV]
    col = jax.lax.broadcasted_iota(jnp.int32, (T, tv), 1) + vt * tv
    col_ok = col < v_real
    logits = jnp.where(col_ok, logits, jnp.float32(-1e30))           # mask V padding

    # ---- pass 0: online logsumexp accumulation over vocab tiles ----
    @pl.when(pss == 0)
    def _pass_lse():
        m_prev = m_sc[...]
        m_new = jnp.maximum(m_prev, jnp.max(logits, axis=-1, keepdims=True))
        s_sc[...] = (s_sc[...] * jnp.exp(m_prev - m_new)
                     + jnp.sum(jnp.exp(logits - m_new), axis=-1, keepdims=True))
        m_sc[...] = m_new

    # ---- pass 1: per-tile probs (gen + copy), log, accumulate loss pieces ----
    @pl.when(pss == 1)
    def _pass_loss():
        soft = jnp.exp(logits - m_sc[...]) * (1.0 / s_sc[...])       # exact softmax
        gen_probs = gen_sc[...] * soft                               # [T, TV]
        # copy mechanism (scatter_add_) restricted to the current vocab tile
        onehot = (copy_ref[0] ==
                  (jax.lax.broadcasted_iota(jnp.int32, (R, tv), 1) + vt * tv)
                  ).astype(f32)                                      # [R, TV]
        copy_add = jnp.dot(copyc_sc[...], onehot,
                           preferred_element_type=f32)               # [T, TV]
        lp = jnp.log(gen_probs + copy_add + 1e-12)
        lab_onehot = (lab_ref[0] == col).astype(f32)                 # [T, TV]
        glp_sc[...] += jnp.sum(lab_onehot * lp, axis=-1, keepdims=True)
        slp_sc[...] += jnp.sum(jnp.where(col_ok, lp, 0.0), axis=-1, keepdims=True)

        @pl.when(vt == nv - 1)
        def _finalize():
            out_ref[0] = jnp.concatenate([glp_sc[...], slp_sc[...]], axis=-1)


def copy_decoder_loss(p, outs, mem, mem_valid, attn_bias, copy_seq, labels,
                      *, tv=_VOCAB_TILE):
    """Fused CopyTokenDecoder + label-smoothing pieces.

    Returns [B, T, 2]: [..., 0] = log p(label_t), [..., 1] = sum_v log p(v).
    """
    B, T, H = outs.shape
    R = mem.shape[1]
    V = p["emb"].shape[0]
    Fh = p["fc1_w"].shape[0]
    bf16 = jnp.bfloat16
    f32 = jnp.float32

    tv = min(tv, V)
    nv = pl.cdiv(V, tv)
    v_pad = nv * tv

    # Pre-transposed, bf16 matmul operands (f32 accumulation inside the kernel).
    in_w = p["in_proj_w"]
    in_b = p["in_proj_b"]
    wq_t = in_w[0:H, :].T.astype(bf16)
    wk_t = in_w[H:2 * H, :].T.astype(bf16)
    wv_t = in_w[2 * H:3 * H, :].T.astype(bf16)
    bq = in_b[0:H].reshape(1, H).astype(f32)
    bk = in_b[H:2 * H].reshape(1, H).astype(f32)
    bv = in_b[2 * H:3 * H].reshape(1, H).astype(f32)
    wo_t = p["out_proj_w"].T.astype(bf16)
    bo = p["out_proj_b"].reshape(1, H).astype(f32)
    fc1_t = p["fc1_w"].T.astype(bf16)
    fc1b = p["fc1_b"].reshape(1, Fh).astype(f32)
    fc2_t = p["fc2_w"].T.astype(bf16)
    fc2b = p["fc2_b"].reshape(1, H).astype(f32)
    dwa_t = p["div_w"][:, 0:H].T.astype(f32)
    dwb_t = p["div_w"][:, H:2 * H].T.astype(f32)
    db = p["div_b"].reshape(1, 2).astype(f32)
    vocab_t = p["emb"].T.astype(bf16)                  # tied embeddings, [H, V]
    if v_pad != V:
        vocab_t = jnp.pad(vocab_t, ((0, 0), (0, v_pad - V)))

    per_b = lambda b, pp, vv: (b, 0, 0)
    const = lambda b, pp, vv: (0, 0)

    in_specs = [
        pl.BlockSpec(memory_space=pltpu.MemorySpace.SMEM),   # attn bias (B,) scalar per batch
        pl.BlockSpec((1, T, H), per_b),                       # decoder states (bf16)
        pl.BlockSpec((1, R, H), per_b),                       # retrieval memory (bf16)
        pl.BlockSpec((1, 1, R), per_b),                       # key-valid mask (lane-dense)
        pl.BlockSpec((1, R, 1), per_b),                       # copy ids
        pl.BlockSpec((1, T, 1), per_b),                       # shifted labels
        pl.BlockSpec((H, H), const), pl.BlockSpec((H, H), const), pl.BlockSpec((H, H), const),
        pl.BlockSpec((1, H), const), pl.BlockSpec((1, H), const), pl.BlockSpec((1, H), const),
        pl.BlockSpec((H, H), const), pl.BlockSpec((1, H), const),
        pl.BlockSpec((1, H), const), pl.BlockSpec((1, H), const),
        pl.BlockSpec((H, Fh), const), pl.BlockSpec((1, Fh), const),
        pl.BlockSpec((Fh, H), const), pl.BlockSpec((1, H), const),
        pl.BlockSpec((1, H), const), pl.BlockSpec((1, H), const),
        pl.BlockSpec((H, 2), const), pl.BlockSpec((H, 2), const), pl.BlockSpec((1, 2), const),
        pl.BlockSpec((H, tv), lambda b, pp, vv: (0, vv)),     # streamed vocab weight tile
    ]

    kern = functools.partial(_fused_decoder_loss_kernel, v_real=V, tv=tv)
    return pl.pallas_call(
        kern,
        out_shape=jax.ShapeDtypeStruct((B, T, 2), f32),
        grid=(B, 2, nv),
        in_specs=in_specs,
        out_specs=pl.BlockSpec((1, T, 2), per_b),
        scratch_shapes=[
            pltpu.VMEM((T, H), f32),   # h4 (ff output, vocab matmul LHS)
            pltpu.VMEM((T, R), f32),   # copy_gate * alignment weights
            pltpu.VMEM((T, 1), f32),   # gen gate
            pltpu.VMEM((T, 1), f32),   # running max
            pltpu.VMEM((T, 1), f32),   # running sum-exp
            pltpu.VMEM((T, 1), f32),   # gathered log-prob at label
            pltpu.VMEM((T, 1), f32),   # sum of log-probs over vocab
        ],
        compiler_params=pltpu.CompilerParams(
            dimension_semantics=("parallel", "arbitrary", "arbitrary")),
    )(attn_bias.reshape(B).astype(f32),
      outs.astype(bf16), mem.astype(bf16),
      mem_valid.reshape(B, 1, R).astype(f32),
      copy_seq.astype(jnp.int32).reshape(B, R, 1),
      labels.astype(jnp.int32).reshape(B, T, 1),
      wq_t, wk_t, wv_t, bq, bk, bv, wo_t, bo,
      p["aln_g"].reshape(1, H).astype(f32), p["aln_b"].reshape(1, H).astype(f32),
      fc1_t, fc1b, fc2_t, fc2b,
      p["ff_g"].reshape(1, H).astype(f32), p["ff_b"].reshape(1, H).astype(f32),
      dwa_t, dwb_t, db, vocab_t)


# ---------------------------------------------------------------------------
# Pallas kernel 2: masked mean pooling + L2 normalize (sentence_emb / code_feature)
# ---------------------------------------------------------------------------
def _masked_pool_kernel(h_ref, m_ref, o_ref):
    h = h_ref[0]                                   # [S, H]
    m = m_ref[0]                                   # [S, 1]
    s = jnp.sum(h * m, axis=0, keepdims=True)      # [1, H]
    cnt = jnp.sum(m)
    pooled = s / cnt
    nrm = jnp.sqrt(jnp.sum(pooled * pooled))
    o_ref[0] = pooled / jnp.maximum(nrm, 1e-12)    # F.normalize(p=2)


def masked_pool(hidden, valid):
    B, S, H = hidden.shape
    m3 = valid.reshape(B, S, 1).astype(jnp.float32)
    per_b = lambda b: (b, 0, 0)
    out = pl.pallas_call(
        _masked_pool_kernel,
        out_shape=jax.ShapeDtypeStruct((B, 1, H), jnp.float32),
        grid=(B,),
        in_specs=[pl.BlockSpec((1, S, H), per_b), pl.BlockSpec((1, S, 1), per_b)],
        out_specs=pl.BlockSpec((1, 1, H), per_b),
        compiler_params=pltpu.CompilerParams(dimension_semantics=("parallel",)),
    )(hidden.astype(jnp.float32), m3)
    return out[:, 0, :]


# ---------------------------------------------------------------------------
# Deterministic parameters + encoder/decoder stand-ins + Seq2Seq forward glue
# ---------------------------------------------------------------------------
def init_params(key, vocab, hidden, ff):
    ks = jax.random.split(key, 8)
    n = lambda k, shape: 0.02 * jax.random.normal(k, shape, dtype=jnp.float32)
    return {
        "emb": n(ks[0], (vocab, hidden)),          # word embeddings (tied to output proj)
        "W_enc": n(ks[1], (hidden, hidden)),
        "b_enc": jnp.zeros((hidden,), jnp.float32),
        "W_dec": n(ks[2], (hidden, hidden)),
        "b_dec": jnp.zeros((hidden,), jnp.float32),
        "in_proj_w": n(ks[3], (3 * hidden, hidden)),
        "in_proj_b": jnp.zeros((3 * hidden,), jnp.float32),
        "out_proj_w": n(ks[4], (hidden, hidden)),
        "out_proj_b": jnp.zeros((hidden,), jnp.float32),
        "aln_g": jnp.ones((hidden,), jnp.float32),
        "aln_b": jnp.zeros((hidden,), jnp.float32),
        "fc1_w": n(ks[5], (ff, hidden)),
        "fc1_b": jnp.zeros((ff,), jnp.float32),
        "fc2_w": n(ks[6], (hidden, ff)),
        "fc2_b": jnp.zeros((hidden,), jnp.float32),
        "ff_g": jnp.ones((hidden,), jnp.float32),
        "ff_b": jnp.zeros((hidden,), jnp.float32),
        "div_w": n(ks[7], (2, 2 * hidden)),
        "div_b": jnp.zeros((2,), jnp.float32),
        "mem_bias_scale": jnp.ones((1,), jnp.float32),
        "mem_bias_base": jnp.zeros((1,), jnp.float32),
    }


def encoder_stub(p, ids):
    # TODO(synk): real model uses an external RoBERTa encoder; replaced with a
    # deterministic embedding + linear + tanh stand-in (attention mask ignored).
    emb = p["emb"][ids]
    return jnp.tanh(emb @ p["W_enc"] + p["b_enc"])


def decoder_stub(p, ids):
    # TODO(synk): real model uses an external transformer decoder with
    # past_key_values cross-attention; replaced with a deterministic stand-in.
    emb = p["emb"][ids]
    return jnp.tanh(emb @ p["W_dec"] + p["b_dec"])


def cross_entropy(logits, labels):
    lse = jax.nn.logsumexp(logits, axis=-1)
    gold = jnp.take_along_axis(logits, labels[:, None], axis=-1)[:, 0]
    return jnp.mean(lse - gold)


def seq2seq_forward(p, source_ids, target_ids, retrieval_target_ids):
    temperature = 0.2
    smoothing = 0.1
    B, T = target_ids.shape
    V = p["emb"].shape[0]

    src_valid = (source_ids != 1).astype(jnp.float32)
    enc_src = encoder_stub(p, source_ids)
    code_feature = masked_pool(enc_src, src_valid)
    code_feature2 = masked_pool(encoder_stub(p, source_ids), src_valid)  # sentence_emb(source_ids)

    labels_b = jnp.arange(B)
    c2c = code_feature @ code_feature2.T
    code2code_loss = cross_entropy(c2c / temperature, labels_b)

    tgt_valid = (target_ids != 1).astype(jnp.float32)
    nl_feature = masked_pool(encoder_stub(p, target_ids), tgt_valid)     # sentence_emb(target_ids)
    c2nl = code_feature @ nl_feature.T
    code2nl_loss = cross_entropy(c2nl / temperature, labels_b)

    p_c2c = jax.nn.softmax(c2c / temperature, axis=-1)
    p_c2nl = jax.nn.softmax(c2nl / temperature, axis=-1)
    align = jnp.sum(p_c2c * (jnp.log(p_c2c) - jnp.log(p_c2nl))) / B      # kl_div batchmean

    out = decoder_stub(p, target_ids)                                    # [B, T, H]
    re_valid = (retrieval_target_ids != 1).astype(jnp.float32)
    mem = encoder_stub(p, retrieval_target_ids)                          # [B, R, H]
    attn_bias = jnp.diag(c2nl) * p["mem_bias_scale"][0] + p["mem_bias_base"][0]  # [B]

    # shifted labels (loss at position t uses target_ids[:, t+1]); last slot is a dummy
    labels_shift = jnp.concatenate(
        [target_ids[:, 1:], jnp.full((B, 1), 1, dtype=target_ids.dtype)], axis=1)

    # fused CopyTokenDecoder + per-token label-smoothing pieces (no [B,T,V] in HBM)
    glp_slp = copy_decoder_loss(p, out, mem, re_valid, attn_bias,
                                retrieval_target_ids, labels_shift)      # [B, T, 2]
    nll = -glp_slp[:, :-1, 0]                       # -log p(label)
    smooth = -glp_slp[:, :-1, 1] / V                # -mean_v log p(v)
    per_tok = (1.0 - smoothing) * nll + smoothing * smooth

    active = (target_ids[:, 1:] != 1).astype(jnp.float32)
    active_sum = jnp.sum(active)
    code_sum_loss = jnp.sum(per_tok * active) / active_sum               # mean over active tokens

    return (code_sum_loss, code_sum_loss * active_sum, active_sum,
            code2code_loss, code2nl_loss, align)


if __name__ == "__main__":
    B, S, T, R = 2, 8, 8, 8
    H, FF, V = 32, 64, 200   # V=200 with vocab tile 128 exercises multi-tile + V-padding

    key = jax.random.PRNGKey(0)
    kp, k1, k2, k3 = jax.random.split(key, 4)
    params = init_params(kp, V, H, FF)

    source_ids = jax.random.randint(k1, (B, S), 2, V, dtype=jnp.int32)
    target_ids = jax.random.randint(k2, (B, T), 2, V, dtype=jnp.int32)
    retrieval_target_ids = jax.random.randint(k3, (B, R), 2, V, dtype=jnp.int32)
    # pad-token (id == 1) tails to exercise the masking paths
    source_ids = source_ids.at[1, -2:].set(1)
    target_ids = target_ids.at[1, -2:].set(1)
    retrieval_target_ids = retrieval_target_ids.at[1, -3:].set(1)

    fwd = jax.jit(seq2seq_forward)
    outs = fwd(params, source_ids, target_ids, retrieval_target_ids)
    jax.block_until_ready(outs)
    print("KERNEL_OK")
</pallas_src>

<mosaic_0001>
module attributes {stable_mosaic.version = 11 : i64} {
  func.func @_masked_pool_kernel(%arg0: i32, %arg1: memref<1x8x32xf32, #tpu.memory_space<vmem>>, %arg2: memref<1x8x1xf32, #tpu.memory_space<vmem>>, %arg3: memref<1x1x32xf32, #tpu.memory_space<vmem>>) attributes {dimension_semantics = [#tpu.dimension_semantics<parallel>], iteration_bounds = array<i64: 2>, scalar_prefetch = 0 : i64, scratch_operands = 0 : i64, tpu.core_type = #tpu.core_type<tc>, window_params = [{transform_indices = @transform_0, window_bounds = array<i64: 1, 8, 32>}, {transform_indices = @transform_1, window_bounds = array<i64: 1, 8, 1>}, {transform_indices = @transform_2, window_bounds = array<i64: 1, 1, 32>}]} {
    %c0 = arith.constant 0 : index
    %c0_0 = arith.constant 0 : index
    %c0_1 = arith.constant 0 : index
    %0 = vector.load %arg1[%c0, %c0_0, %c0_1] : memref<1x8x32xf32, #tpu.memory_space<vmem>>, vector<1x8x32xf32>
    %1 = vector.shape_cast %0 : vector<1x8x32xf32> to vector<8x32xf32>
    %c0_2 = arith.constant 0 : index
    %c0_3 = arith.constant 0 : index
    %c0_4 = arith.constant 0 : index
    %2 = vector.load %arg2[%c0_2, %c0_3, %c0_4] : memref<1x8x1xf32, #tpu.memory_space<vmem>>, vector<1x8x1xf32>
    %3 = vector.shape_cast %2 : vector<1x8x1xf32> to vector<8x1xf32>
    %4 = vector.broadcast %3 : vector<8x1xf32> to vector<8x32xf32>
    %5 = arith.mulf %1, %4 : vector<8x32xf32>
    %cst = arith.constant dense<0.000000e+00> : vector<32xf32>
    %6 = vector.multi_reduction <add>, %5, %cst [0] : vector<8x32xf32> to vector<32xf32>
    %7 = vector.shape_cast %6 : vector<32xf32> to vector<1x32xf32>
    %8 = vector.shape_cast %3 : vector<8x1xf32> to vector<1x8x1xf32>
    %cst_5 = arith.constant dense<0.000000e+00> : vector<1xf32>
    %9 = vector.multi_reduction <add>, %8, %cst_5 [1, 2] : vector<1x8x1xf32> to vector<1xf32>
    %10 = vector.shape_cast %9 : vector<1xf32> to vector<1x1x1xf32>
    %11 = vector.extract %10[0, 0, 0] : f32 from vector<1x1x1xf32>
    %12 = vector.broadcast %11 : f32 to vector<1x32xf32>
    %13 = arith.divf %7, %12 : vector<1x32xf32>
    %14 = arith.mulf %13, %13 : vector<1x32xf32>
    %15 = vector.shape_cast %14 : vector<1x32xf32> to vector<1x1x32xf32>
    %cst_6 = arith.constant dense<0.000000e+00> : vector<1xf32>
    %16 = vector.multi_reduction <add>, %15, %cst_6 [1, 2] : vector<1x1x32xf32> to vector<1xf32>
    %17 = vector.shape_cast %16 : vector<1xf32> to vector<1x1x1xf32>
    %18 = vector.extract %17[0, 0, 0] : f32 from vector<1x1x1xf32>
    %19 = math.sqrt %18 : f32
    %cst_7 = arith.constant 9.99999996E-13 : f32
    %20 = arith.maximumf %19, %cst_7 : f32
    %21 = vector.broadcast %20 : f32 to vector<1x32xf32>
    %22 = arith.divf %13, %21 : vector<1x32xf32>
    %c0_8 = arith.constant 0 : index
    %c0_9 = arith.constant 0 : index
    %c0_10 = arith.constant 0 : index
    %23 = vector.load %arg3[%c0_8, %c0_9, %c0_10] : memref<1x1x32xf32, #tpu.memory_space<vmem>>, vector<1x1x32xf32>
    %24 = vector.shape_cast %23 : vector<1x1x32xf32> to vector<1x32xf32>
    %25 = vector.shape_cast %22 : vector<1x32xf32> to vector<1x1x32xf32>
    tpu.vector_store %arg3[%c0_8, %c0_9, %c0_10], %25 {strides = array<i32>} : memref<1x1x32xf32, #tpu.memory_space<vmem>>, vector<1x1x32xf32>,
    return
  }
  func.func @transform_0(%arg0: i32) -> (i32, i32, i32) {
    %c0_i32 = arith.constant 0 : i32
    %c0_i32_0 = arith.constant 0 : i32
    %c0_i32_1 = arith.constant 0 : i32
    return %arg0, %c0_i32, %c0_i32_0 : i32, i32, i32
  }
  func.func @transform_1(%arg0: i32) -> (i32, i32, i32) {
    %c0_i32 = arith.constant 0 : i32
    %c0_i32_0 = arith.constant 0 : i32
    %c0_i32_1 = arith.constant 0 : i32
    return %arg0, %c0_i32, %c0_i32_0 : i32, i32, i32
  }
  func.func @transform_2(%arg0: i32) -> (i32, i32, i32) {
    %c0_i32 = arith.constant 0 : i32
    %c0_i32_0 = arith.constant 0 : i32
    %c0_i32_1 = arith.constant 0 : i32
    return %arg0, %c0_i32, %c0_i32_0 : i32, i32, i32
  }
}

module attributes {stable_mosaic.version = 11 : i64} {
  func.func @_fused_decoder_loss_kernel(%arg0: i32, %arg1: i32, %arg2: i32, %arg3: memref<2xf32, #tpu.memory_space<smem>>, %arg4: memref<1x8x32xbf16, #tpu.memory_space<vmem>>, %arg5: memref<1x8x32xbf16, #tpu.memory_space<vmem>>, %arg6: memref<1x1x8xf32, #tpu.memory_space<vmem>>, %arg7: memref<1x8x1xi32, #tpu.memory_space<vmem>>, %arg8: memref<1x8x1xi32, #tpu.memory_space<vmem>>, %arg9: memref<32x32xbf16, #tpu.memory_space<vmem>>, %arg10: memref<32x32xbf16, #tpu.memory_space<vmem>>, %arg11: memref<32x32xbf16, #tpu.memory_space<vmem>>, %arg12: memref<1x32xf32, #tpu.memory_space<vmem>>, %arg13: memref<1x32xf32, #tpu.memory_space<vmem>>, %arg14: memref<1x32xf32, #tpu.memory_space<vmem>>, %arg15: memref<32x32xbf16, #tpu.memory_space<vmem>>, %arg16: memref<1x32xf32, #tpu.memory_space<vmem>>, %arg17: memref<1x32xf32, #tpu.memory_space<vmem>>, %arg18: memref<1x32xf32, #tpu.memory_space<vmem>>, %arg19: memref<32x64xbf16, #tpu.memory_space<vmem>>, %arg20: memref<1x64xf32, #tpu.memory_space<vmem>>, %arg21: memref<64x32xbf16, #tpu.memory_space<vmem>>, %arg22: memref<1x32xf32, #tpu.memory_space<vmem>>, %arg23: memref<1x32xf32, #tpu.memory_space<vmem>>, %arg24: memref<1x32xf32, #tpu.memory_space<vmem>>, %arg25: memref<32x2xf32, #tpu.memory_space<vmem>>, %arg26: memref<32x2xf32, #tpu.memory_space<vmem>>, %arg27: memref<1x2xf32, #tpu.memory_space<vmem>>, %arg28: memref<32x128xbf16, #tpu.memory_space<vmem>>, %arg29: memref<1x8x2xf32, #tpu.memory_space<vmem>>, %arg30: memref<8x32xf32, #tpu.memory_space<vmem>>, %arg31: memref<8x8xf32, #tpu.memory_space<vmem>>, %arg32: memref<8x1xf32, #tpu.memory_space<vmem>>, %arg33: memref<8x1xf32, #tpu.memory_space<vmem>>, %arg34: memref<8x1xf32, #tpu.memory_space<vmem>>, %arg35: memref<8x1xf32, #tpu.memory_space<vmem>>, %arg36: memref<8x1xf32, #tpu.memory_space<vmem>>) attributes {dimension_semantics = [#tpu.dimension_semantics<parallel>, #tpu.dimension_semantics<arbitrary>, #tpu.dimension_semantics<arbitrary>], iteration_bounds = array<i64: 2, 2, 2>, scalar_prefetch = 0 : i64, scratch_operands = 7 : i64, tpu.core_type = #tpu.core_type<tc>, window_params = [{transform_indices = @transform_0, window_bounds = array<i64: 2>}, {transform_indices = @transform_1, window_bounds = array<i64: 1, 8, 32>}, {transform_indices = @transform_2, window_bounds = array<i64: 1, 8, 32>}, {transform_indices = @transform_3, window_bounds = array<i64: 1, 1, 8>}, {transform_indices = @transform_4, window_bounds = array<i64: 1, 8, 1>}, {transform_indices = @transform_5, window_bounds = array<i64: 1, 8, 1>}, {pipeline_mode = #tpu.pipeline_mode<synchronous>, transform_indices = @transform_6, window_bounds = array<i64: 32, 32>}, {pipeline_mode = #tpu.pipeline_mode<synchronous>, transform_indices = @transform_7, window_bounds = array<i64: 32, 32>}, {pipeline_mode = #tpu.pipeline_mode<synchronous>, transform_indices = @transform_8, window_bounds = array<i64: 32, 32>}, {pipeline_mode = #tpu.pipeline_mode<synchronous>, transform_indices = @transform_9, window_bounds = array<i64: 1, 32>}, {pipeline_mode = #tpu.pipeline_mode<synchronous>, transform_indices = @transform_10, window_bounds = array<i64: 1, 32>}, {pipeline_mode = #tpu.pipeline_mode<synchronous>, transform_indices = @transform_11, window_bounds = array<i64: 1, 32>}, {pipeline_mode = #tpu.pipeline_mode<synchronous>, transform_indices = @transform_12, window_bounds = array<i64: 32, 32>}, {pipeline_mode = #tpu.pipeline_mode<synchronous>, transform_indices = @transform_13, window_bounds = array<i64: 1, 32>}, {pipeline_mode = #tpu.pipeline_mode<synchronous>, transform_indices = @transform_14, window_bounds = array<i64: 1, 32>}, {pipeline_mode = #tpu.pipeline_mode<synchronous>, transform_indices = @transform_15, window_bounds = array<i64: 1, 32>}, {pipeline_mode = #tpu.pipeline_mode<synchronous>, transform_indices = @transform_16, window_bounds = array<i64: 32, 64>}, {pipeline_mode = #tpu.pipeline_mode<synchronous>, transform_indices = @transform_17, window_bounds = array<i64: 1, 64>}, {pipeline_mode = #tpu.pipeline_mode<synchronous>, transform_indices = @transform_18, window_bounds = array<i64: 64, 32>}, {pipeline_mode = #tpu.pipeline_mode<synchronous>, transform_indices = @transform_19, window_bounds = array<i64: 1, 32>}, {pipeline_mode = #tpu.pipeline_mode<synchronous>, transform_indices = @transform_20, window_bounds = array<i64: 1, 32>}, {pipeline_mode = #tpu.pipeline_mode<synchronous>, transform_indices = @transform_21, window_bounds = array<i64: 1, 32>}, {pipeline_mode = #tpu.pipeline_mode<synchronous>, transform_indices = @transform_22, window_bounds = array<i64: 32, 2>}, {pipeline_mode = #tpu.pipeline_mode<synchronous>, transform_indices = @transform_23, window_bounds = array<i64: 32, 2>}, {pipeline_mode = #tpu.pipeline_mode<synchronous>, transform_indices = @transform_24, window_bounds = array<i64: 1, 2>}, {transform_indices = @transform_25, window_bounds = array<i64: 32, 128>}, {transform_indices = @transform_26, window_bounds = array<i64: 1, 8, 2>}]} {
    %c0_i32 = arith.constant 0 : i32
    %0 = arith.cmpi eq, %arg1, %c0_i32 : i32
    %c0_i32_0 = arith.constant 0 : i32
    %1 = arith.cmpi eq, %arg2, %c0_i32_0 : i32
    %2 = arith.andi %0, %1 : i1
    %3 = arith.extui %2 : i1 to i32
    %c0_i32_1 = arith.constant 0 : i32
    %4 = arith.cmpi ne, %3, %c0_i32_1 : i32
    scf.if %4 {
      %c0_9 = arith.constant 0 : index
      %c0_10 = arith.constant 0 : index
      %c0_11 = arith.constant 0 : index
      %23 = vector.load %arg4[%c0_9, %c0_10, %c0_11] : memref<1x8x32xbf16, #tpu.memory_space<vmem>>, vector<1x8x32xbf16>
      %24 = vector.shape_cast %23 : vector<1x8x32xbf16> to vector<8x32xbf16>
      %c0_12 = arith.constant 0 : index
      %c0_13 = arith.constant 0 : index
      %c0_14 = arith.constant 0 : index
      %25 = vector.load %arg5[%c0_12, %c0_13, %c0_14] : memref<1x8x32xbf16, #tpu.memory_space<vmem>>, vector<1x8x32xbf16>
      %26 = vector.shape_cast %25 : vector<1x8x32xbf16> to vector<8x32xbf16>
      %27 = arith.extf %24 : vector<8x32xbf16> to vector<8x32xf32>
      %c0_15 = arith.constant 0 : index
      %c0_16 = arith.constant 0 : index
      %28 = vector.load %arg9[%c0_15, %c0_16] : memref<32x32xbf16, #tpu.memory_space<vmem>>, vector<32x32xbf16>
      %cst_17 = arith.constant dense<0.000000e+00> : vector<8x32xf32>
      %29 = tpu.matmul %24, %28, %cst_17 {dimension_numbers = #tpu.dot_dimension_numbers<[1], [0], [0], [1], [0, 0, 1, 1], [], []>} : vector<8x32xbf16>, vector<32x32xbf16>, vector<8x32xf32> -> vector<8x32xf32>
      %c0_18 = arith.constant 0 : index
      %c0_19 = arith.constant 0 : index
      %30 = vector.load %arg12[%c0_18, %c0_19] : memref<1x32xf32, #tpu.memory_space<vmem>>, vector<1x32xf32>
      %31 = vector.broadcast %30 : vector<1x32xf32> to vector<8x32xf32>
      %32 = arith.addf %29, %31 : vector<8x32xf32>
      %cst_20 = arith.constant 0.176776692 : f32
      %33 = vector.broadcast %cst_20 : f32 to vector<8x32xf32>
      %34 = arith.mulf %32, %33 : vector<8x32xf32>
      %c0_21 = arith.constant 0 : index
      %c0_22 = arith.constant 0 : index
      %35 = vector.load %arg10[%c0_21, %c0_22] : memref<32x32xbf16, #tpu.memory_space<vmem>>, vector<32x32xbf16>
      %cst_23 = arith.constant dense<0.000000e+00> : vector<8x32xf32>
      %36 = tpu.matmul %26, %35, %cst_23 {dimension_numbers = #tpu.dot_dimension_numbers<[1], [0], [0], [1], [0, 0, 1, 1], [], []>} : vector<8x32xbf16>, vector<32x32xbf16>, vector<8x32xf32> -> vector<8x32xf32>
      %c0_24 = arith.constant 0 : index
      %c0_25 = arith.constant 0 : index
      %37 = vector.load %arg13[%c0_24, %c0_25] : memref<1x32xf32, #tpu.memory_space<vmem>>, vector<1x32xf32>
      %38 = vector.broadcast %37 : vector<1x32xf32> to vector<8x32xf32>
      %39 = arith.addf %36, %38 : vector<8x32xf32>
      %c0_26 = arith.constant 0 : index
      %c0_27 = arith.constant 0 : index
      %40 = vector.load %arg11[%c0_26, %c0_27] : memref<32x32xbf16, #tpu.memory_space<vmem>>, vector<32x32xbf16>
      %cst_28 = arith.constant dense<0.000000e+00> : vector<8x32xf32>
      %41 = tpu.matmul %26, %40, %cst_28 {dimension_numbers = #tpu.dot_dimension_numbers<[1], [0], [0], [1], [0, 0, 1, 1], [], []>} : vector<8x32xbf16>, vector<32x32xbf16>, vector<8x32xf32> -> vector<8x32xf32>
      %c0_29 = arith.constant 0 : index
      %c0_30 = arith.constant 0 : index
      %42 = vector.load %arg14[%c0_29, %c0_30] : memref<1x32xf32, #tpu.memory_space<vmem>>, vector<1x32xf32>
      %43 = vector.broadcast %42 : vector<1x32xf32> to vector<8x32xf32>
      %44 = arith.addf %41, %43 : vector<8x32xf32>
      %45 = arith.truncf %34 : vector<8x32xf32> to vector<8x32xbf16>
      %46 = arith.truncf %39 : vector<8x32xf32> to vector<8x32xbf16>
      %cst_31 = arith.constant dense<0.000000e+00> : vector<8x8xf32>
      %47 = tpu.matmul %45, %46, %cst_31 {dimension_numbers = #tpu.dot_dimension_numbers<[1], [1], [0], [0], [0, 0, 1, 0], [], []>} : vector<8x32xbf16>, vector<8x32xbf16>, vector<8x8xf32> -> vector<8x8xf32>
      %48 = arith.index_cast %arg0 : i32 to index
      %49 = memref.load %arg3[%48] : memref<2xf32, #tpu.memory_space<smem>>
      %50 = vector.broadcast %49 : f32 to vector<8x8xf32>
      %51 = arith.addf %47, %50 : vector<8x8xf32>
      %c0_32 = arith.constant 0 : index
      %c0_33 = arith.constant 0 : index
      %c0_34 = arith.constant 0 : index
      %52 = vector.load %arg6[%c0_32, %c0_33, %c0_34] : memref<1x1x8xf32, #tpu.memory_space<vmem>>, vector<1x1x8xf32>
      %53 = vector.shape_cast %52 : vector<1x1x8xf32> to vector<1x8xf32>
      %cst_35 = arith.constant 5.000000e-01 : f32
      %54 = vector.broadcast %cst_35 : f32 to vector<1x8xf32>
      %55 = arith.cmpf ogt, %53, %54 : vector<1x8xf32>
      %cst_36 = arith.constant -1.000000e+30 : f32
      %56 = vector.shape_cast %55 : vector<1x8xi1> to vector<1x8xi1>
      %57 = vector.broadcast %56 : vector<1x8xi1> to vector<8x8xi1>
      %58 = vector.broadcast %cst_36 : f32 to vector<8x8xf32>
      %59 = arith.select %57, %51, %58 : vector<8x8xi1>, vector<8x8xf32>
      %cst_37 = arith.constant dense<0xFF800000> : vector<8xf32>
      %60 = vector.multi_reduction <maximumf>, %59, %cst_37 [1] : vector<8x8xf32> to vector<8xf32>
      %61 = vector.shape_cast %60 : vector<8xf32> to vector<8x1xf32>
      %62 = vector.broadcast %61 : vector<8x1xf32> to vector<8x8xf32>
      %63 = arith.subf %59, %62 : vector<8x8xf32>
      %64 = math.exp %63 : vector<8x8xf32>
      %cst_38 = arith.constant dense<0.000000e+00> : vector<8xf32>
      %65 = vector.multi_reduction <add>, %64, %cst_38 [1] : vector<8x8xf32> to vector<8xf32>
      %66 = vector.shape_cast %65 : vector<8xf32> to vector<8x1xf32>
      %67 = tpu.reciprocal %66 {approx = true} : vector<8x1xf32> -> vector<8x1xf32>
      %68 = vector.broadcast %67 : vector<8x1xf32> to vector<8x8xf32>
      %69 = arith.mulf %64, %68 : vector<8x8xf32>
      %70 = arith.truncf %69 : vector<8x8xf32> to vector<8x8xbf16>
      %71 = arith.truncf %44 : vector<8x32xf32> to vector<8x32xbf16>
      %cst_39 = arith.constant dense<0.000000e+00> : vector<8x32xf32>
      %72 = tpu.matmul %70, %71, %cst_39 {dimension_numbers = #tpu.dot_dimension_numbers<[1], [0], [0], [1], [0, 0, 1, 1], [], []>} : vector<8x8xbf16>, vector<8x32xbf16>, vector<8x32xf32> -> vector<8x32xf32>
      %73 = arith.truncf %72 : vector<8x32xf32> to vector<8x32xbf16>
      %c0_40 = arith.constant 0 : index
      %c0_41 = arith.constant 0 : index
      %74 = vector.load %arg15[%c0_40, %c0_41] : memref<32x32xbf16, #tpu.memory_space<vmem>>, vector<32x32xbf16>
      %cst_42 = arith.constant dense<0.000000e+00> : vector<8x32xf32>
      %75 = tpu.matmul %73, %74, %cst_42 {dimension_numbers = #tpu.dot_dimension_numbers<[1], [0], [0], [1], [0, 0, 1, 1], [], []>} : vector<8x32xbf16>, vector<32x32xbf16>, vector<8x32xf32> -> vector<8x32xf32>
      %c0_43 = arith.constant 0 : index
      %c0_44 = arith.constant 0 : index
      %76 = vector.load %arg16[%c0_43, %c0_44] : memref<1x32xf32, #tpu.memory_space<vmem>>, vector<1x32xf32>
      %77 = vector.broadcast %76 : vector<1x32xf32> to vector<8x32xf32>
      %78 = arith.addf %75, %77 : vector<8x32xf32>
      %c0_45 = arith.constant 0 : index
      %c0_46 = arith.constant 0 : index
      %79 = vector.load %arg17[%c0_45, %c0_46] : memref<1x32xf32, #tpu.memory_space<vmem>>, vector<1x32xf32>
      %c0_47 = arith.constant 0 : index
      %c0_48 = arith.constant 0 : index
      %80 = vector.load %arg18[%c0_47, %c0_48] : memref<1x32xf32, #tpu.memory_space<vmem>>, vector<1x32xf32>
      %cst_49 = arith.constant dense<0.000000e+00> : vector<8xf32>
      %81 = vector.multi_reduction <add>, %78, %cst_49 [1] : vector<8x32xf32> to vector<8xf32>
      %82 = vector.shape_cast %81 : vector<8xf32> to vector<8x1xf32>
      %cst_50 = arith.constant 3.200000e+01 : f32
      %83 = vector.broadcast %cst_50 : f32 to vector<8x1xf32>
      %84 = arith.divf %82, %83 : vector<8x1xf32>
      %85 = vector.broadcast %84 : vector<8x1xf32> to vector<8x32xf32>
      %86 = arith.subf %78, %85 : vector<8x32xf32>
      %87 = arith.mulf %86, %86 : vector<8x32xf32>
      %cst_51 = arith.constant dense<0.000000e+00> : vector<8xf32>
      %88 = vector.multi_reduction <add>, %87, %cst_51 [1] : vector<8x32xf32> to vector<8xf32>
      %89 = vector.shape_cast %88 : vector<8xf32> to vector<8x1xf32>
      %cst_52 = arith.constant 3.200000e+01 : f32
      %90 = vector.broadcast %cst_52 : f32 to vector<8x1xf32>
      %91 = arith.divf %89, %90 : vector<8x1xf32>
      %92 = vector.broadcast %84 : vector<8x1xf32> to vector<8x32xf32>
      %93 = arith.subf %78, %92 : vector<8x32xf32>
      %cst_53 = arith.constant 9.99999974E-6 : f32
      %94 = vector.broadcast %cst_53 : f32 to vector<8x1xf32>
      %95 = arith.addf %91, %94 : vector<8x1xf32>
      %96 = math.rsqrt %95 : vector<8x1xf32>
      %97 = vector.broadcast %96 : vector<8x1xf32> to vector<8x32xf32>
      %98 = arith.mulf %93, %97 : vector<8x32xf32>
      %99 = vector.broadcast %79 : vector<1x32xf32> to vector<8x32xf32>
      %100 = arith.mulf %98, %99 : vector<8x32xf32>
      %101 = vector.broadcast %80 : vector<1x32xf32> to vector<8x32xf32>
      %102 = arith.addf %100, %101 : vector<8x32xf32>
      %c0_54 = arith.constant 0 : index
      %c0_55 = arith.constant 0 : index
      %103 = vector.load %arg25[%c0_54, %c0_55] : memref<32x2xf32, #tpu.memory_space<vmem>>, vector<32x2xf32>
      %cst_56 = arith.constant dense<0.000000e+00> : vector<8x2xf32>
      %104 = tpu.matmul %27, %103, %cst_56 {dimension_numbers = #tpu.dot_dimension_numbers<[1], [0], [0], [1], [0, 0, 1, 1], [], []>} : vector<8x32xf32>, vector<32x2xf32>, vector<8x2xf32> -> vector<8x2xf32>
      %c0_57 = arith.constant 0 : index
      %c0_58 = arith.constant 0 : index
      %105 = vector.load %arg26[%c0_57, %c0_58] : memref<32x2xf32, #tpu.memory_space<vmem>>, vector<32x2xf32>
      %cst_59 = arith.constant dense<0.000000e+00> : vector<8x2xf32>
      %106 = tpu.matmul %102, %105, %cst_59 {dimension_numbers = #tpu.dot_dimension_numbers<[1], [0], [0], [1], [0, 0, 1, 1], [], []>} : vector<8x32xf32>, vector<32x2xf32>, vector<8x2xf32> -> vector<8x2xf32>
      %107 = arith.addf %104, %106 : vector<8x2xf32>
      %c0_60 = arith.constant 0 : index
      %c0_61 = arith.constant 0 : index
      %108 = vector.load %arg27[%c0_60, %c0_61] : memref<1x2xf32, #tpu.memory_space<vmem>>, vector<1x2xf32>
      %109 = vector.broadcast %108 : vector<1x2xf32> to vector<8x2xf32>
      %110 = arith.addf %107, %109 : vector<8x2xf32>
      %cst_62 = arith.constant dense<0xFF800000> : vector<8xf32>
      %111 = vector.multi_reduction <maximumf>, %110, %cst_62 [1] : vector<8x2xf32> to vector<8xf32>
      %112 = vector.shape_cast %111 : vector<8xf32> to vector<8x1xf32>
      %113 = vector.broadcast %112 : vector<8x1xf32> to vector<8x2xf32>
      %114 = arith.subf %110, %113 : vector<8x2xf32>
      %115 = math.exp %114 : vector<8x2xf32>
      %cst_63 = arith.constant dense<0.000000e+00> : vector<8xf32>
      %116 = vector.multi_reduction <add>, %115, %cst_63 [1] : vector<8x2xf32> to vector<8xf32>
      %117 = vector.shape_cast %116 : vector<8xf32> to vector<8x1xf32>
      %118 = tpu.reciprocal %117 {approx = true} : vector<8x1xf32> -> vector<8x1xf32>
      %119 = vector.broadcast %118 : vector<8x1xf32> to vector<8x2xf32>
      %120 = arith.mulf %115, %119 : vector<8x2xf32>
      %121 = vector.extract_strided_slice %120 {offsets = [0, 0], sizes = [8, 1], strides = [1, 1]} : vector<8x2xf32> to vector<8x1xf32>
      %c0_64 = arith.constant 0 : index
      %c0_65 = arith.constant 0 : index
      %122 = vector.load %arg32[%c0_64, %c0_65] : memref<8x1xf32, #tpu.memory_space<vmem>>, vector<8x1xf32>
      tpu.vector_store %arg32[%c0_64, %c0_65], %121 {strides = array<i32>} : memref<8x1xf32, #tpu.memory_space<vmem>>, vector<8x1xf32>,
      %123 = vector.extract_strided_slice %120 {offsets = [0, 1], sizes = [8, 1], strides = [1, 1]} : vector<8x2xf32> to vector<8x1xf32>
      %124 = vector.broadcast %123 : vector<8x1xf32> to vector<8x8xf32>
      %125 = arith.mulf %124, %69 : vector<8x8xf32>
      %c0_66 = arith.constant 0 : index
      %c0_67 = arith.constant 0 : index
      %126 = vector.load %arg31[%c0_66, %c0_67] : memref<8x8xf32, #tpu.memory_space<vmem>>, vector<8x8xf32>
      tpu.vector_store %arg31[%c0_66, %c0_67], %125 {strides = array<i32>} : memref<8x8xf32, #tpu.memory_space<vmem>>, vector<8x8xf32>,
      %127 = arith.addf %27, %78 : vector<8x32xf32>
      %c0_68 = arith.constant 0 : index
      %c0_69 = arith.constant 0 : index
      %128 = vector.load %arg17[%c0_68, %c0_69] : memref<1x32xf32, #tpu.memory_space<vmem>>, vector<1x32xf32>
      %c0_70 = arith.constant 0 : index
      %c0_71 = arith.constant 0 : index
      %129 = vector.load %arg18[%c0_70, %c0_71] : memref<1x32xf32, #tpu.memory_space<vmem>>, vector<1x32xf32>
      %cst_72 = arith.constant dense<0.000000e+00> : vector<8xf32>
      %130 = vector.multi_reduction <add>, %127, %cst_72 [1] : vector<8x32xf32> to vector<8xf32>
      %131 = vector.shape_cast %130 : vector<8xf32> to vector<8x1xf32>
      %cst_73 = arith.constant 3.200000e+01 : f32
      %132 = vector.broadcast %cst_73 : f32 to vector<8x1xf32>
      %133 = arith.divf %131, %132 : vector<8x1xf32>
      %134 = vector.broadcast %133 : vector<8x1xf32> to vector<8x32xf32>
      %135 = arith.subf %127, %134 : vector<8x32xf32>
      %136 = arith.mulf %135, %135 : vector<8x32xf32>
      %cst_74 = arith.constant dense<0.000000e+00> : vector<8xf32>
      %137 = vector.multi_reduction <add>, %136, %cst_74 [1] : vector<8x32xf32> to vector<8xf32>
      %138 = vector.shape_cast %137 : vector<8xf32> to vector<8x1xf32>
      %cst_75 = arith.constant 3.200000e+01 : f32
      %139 = vector.broadcast %cst_75 : f32 to vector<8x1xf32>
      %140 = arith.divf %138, %139 : vector<8x1xf32>
      %141 = vector.broadcast %133 : vector<8x1xf32> to vector<8x32xf32>
      %142 = arith.subf %127, %141 : vector<8x32xf32>
      %cst_76 = arith.constant 9.99999974E-6 : f32
      %143 = vector.broadcast %cst_76 : f32 to vector<8x1xf32>
      %144 = arith.addf %140, %143 : vector<8x1xf32>
      %145 = math.rsqrt %144 : vector<8x1xf32>
      %146 = vector.broadcast %145 : vector<8x1xf32> to vector<8x32xf32>
      %147 = arith.mulf %142, %146 : vector<8x32xf32>
      %148 = vector.broadcast %128 : vector<1x32xf32> to vector<8x32xf32>
      %149 = arith.mulf %147, %148 : vector<8x32xf32>
      %150 = vector.broadcast %129 : vector<1x32xf32> to vector<8x32xf32>
      %151 = arith.addf %149, %150 : vector<8x32xf32>
      %152 = arith.truncf %151 : vector<8x32xf32> to vector<8x32xbf16>
      %c0_77 = arith.constant 0 : index
      %c0_78 = arith.constant 0 : index
      %153 = vector.load %arg19[%c0_77, %c0_78] : memref<32x64xbf16, #tpu.memory_space<vmem>>, vector<32x64xbf16>
      %cst_79 = arith.constant dense<0.000000e+00> : vector<8x64xf32>
      %154 = tpu.matmul %152, %153, %cst_79 {dimension_numbers = #tpu.dot_dimension_numbers<[1], [0], [0], [1], [0, 0, 1, 1], [], []>} : vector<8x32xbf16>, vector<32x64xbf16>, vector<8x64xf32> -> vector<8x64xf32>
      %c0_80 = arith.constant 0 : index
      %c0_81 = arith.constant 0 : index
      %155 = vector.load %arg20[%c0_80, %c0_81] : memref<1x64xf32, #tpu.memory_space<vmem>>, vector<1x64xf32>
      %156 = vector.broadcast %155 : vector<1x64xf32> to vector<8x64xf32>
      %157 = arith.addf %154, %156 : vector<8x64xf32>
      %cst_82 = arith.constant 0.000000e+00 : f32
      %158 = vector.broadcast %cst_82 : f32 to vector<8x64xf32>
      %159 = arith.maximumf %157, %158 : vector<8x64xf32>
      %160 = arith.truncf %159 : vector<8x64xf32> to vector<8x64xbf16>
      %c0_83 = arith.constant 0 : index
      %c0_84 = arith.constant 0 : index
      %161 = vector.load %arg21[%c0_83, %c0_84] : memref<64x32xbf16, #tpu.memory_space<vmem>>, vector<64x32xbf16>
      %cst_85 = arith.constant dense<0.000000e+00> : vector<8x32xf32>
      %162 = tpu.matmul %160, %161, %cst_85 {dimension_numbers = #tpu.dot_dimension_numbers<[1], [0], [0], [1], [0, 0, 1, 1], [], []>} : vector<8x64xbf16>, vector<64x32xbf16>, vector<8x32xf32> -> vector<8x32xf32>
      %c0_86 = arith.constant 0 : index
      %c0_87 = arith.constant 0 : index
      %163 = vector.load %arg22[%c0_86, %c0_87] : memref<1x32xf32, #tpu.memory_space<vmem>>, vector<1x32xf32>
      %164 = vector.broadcast %163 : vector<1x32xf32> to vector<8x32xf32>
      %165 = arith.addf %162, %164 : vector<8x32xf32>
      %c0_88 = arith.constant 0 : index
      %c0_89 = arith.constant 0 : index
      %166 = vector.load %arg23[%c0_88, %c0_89] : memref<1x32xf32, #tpu.memory_space<vmem>>, vector<1x32xf32>
      %c0_90 = arith.constant 0 : index
      %c0_91 = arith.constant 0 : index
      %167 = vector.load %arg24[%c0_90, %c0_91] : memref<1x32xf32, #tpu.memory_space<vmem>>, vector<1x32xf32>
      %cst_92 = arith.constant dense<0.000000e+00> : vector<8xf32>
      %168 = vector.multi_reduction <add>, %165, %cst_92 [1] : vector<8x32xf32> to vector<8xf32>
      %169 = vector.shape_cast %168 : vector<8xf32> to vector<8x1xf32>
      %cst_93 = arith.constant 3.200000e+01 : f32
      %170 = vector.broadcast %cst_93 : f32 to vector<8x1xf32>
      %171 = arith.divf %169, %170 : vector<8x1xf32>
      %172 = vector.broadcast %171 : vector<8x1xf32> to vector<8x32xf32>
      %173 = arith.subf %165, %172 : vector<8x32xf32>
      %174 = arith.mulf %173, %173 : vector<8x32xf32>
      %cst_94 = arith.constant dense<0.000000e+00> : vector<8xf32>
      %175 = vector.multi_reduction <add>, %174, %cst_94 [1] : vector<8x32xf32> to vector<8xf32>
      %176 = vector.shape_cast %175 : vector<8xf32> to vector<8x1xf32>
      %cst_95 = arith.constant 3.200000e+01 : f32
      %177 = vector.broadcast %cst_95 : f32 to vector<8x1xf32>
      %178 = arith.divf %176, %177 : vector<8x1xf32>
      %179 = vector.broadcast %171 : vector<8x1xf32> to vector<8x32xf32>
      %180 = arith.subf %165, %179 : vector<8x32xf32>
      %cst_96 = arith.constant 9.99999974E-6 : f32
      %181 = vector.broadcast %cst_96 : f32 to vector<8x1xf32>
      %182 = arith.addf %178, %181 : vector<8x1xf32>
      %183 = math.rsqrt %182 : vector<8x1xf32>
      %184 = vector.broadcast %183 : vector<8x1xf32> to vector<8x32xf32>
      %185 = arith.mulf %180, %184 : vector<8x32xf32>
      %186 = vector.broadcast %166 : vector<1x32xf32> to vector<8x32xf32>
      %187 = arith.mulf %185, %186 : vector<8x32xf32>
      %188 = vector.broadcast %167 : vector<1x32xf32> to vector<8x32xf32>
      %189 = arith.addf %187, %188 : vector<8x32xf32>
      %c0_97 = arith.constant 0 : index
      %c0_98 = arith.constant 0 : index
      %190 = vector.load %arg30[%c0_97, %c0_98] : memref<8x32xf32, #tpu.memory_space<vmem>>, vector<8x32xf32>
      tpu.vector_store %arg30[%c0_97, %c0_98], %189 {strides = array<i32>} : memref<8x32xf32, #tpu.memory_space<vmem>>, vector<8x32xf32>,
      %cst_99 = arith.constant -1.000000e+30 : f32
      %191 = vector.broadcast %cst_99 : f32 to vector<8x1xf32>
      %c0_100 = arith.constant 0 : index
      %c0_101 = arith.constant 0 : index
      %192 = vector.load %arg33[%c0_100, %c0_101] : memref<8x1xf32, #tpu.memory_space<vmem>>, vector<8x1xf32>
      tpu.vector_store %arg33[%c0_100, %c0_101], %191 {strides = array<i32>} : memref<8x1xf32, #tpu.memory_space<vmem>>, vector<8x1xf32>,
      %cst_102 = arith.constant 0.000000e+00 : f32
      %193 = vector.broadcast %cst_102 : f32 to vector<8x1xf32>
      %c0_103 = arith.constant 0 : index
      %c0_104 = arith.constant 0 : index
      %194 = vector.load %arg34[%c0_103, %c0_104] : memref<8x1xf32, #tpu.memory_space<vmem>>, vector<8x1xf32>
      tpu.vector_store %arg34[%c0_103, %c0_104], %193 {strides = array<i32>} : memref<8x1xf32, #tpu.memory_space<vmem>>, vector<8x1xf32>,
      %cst_105 = arith.constant 0.000000e+00 : f32
      %195 = vector.broadcast %cst_105 : f32 to vector<8x1xf32>
      %c0_106 = arith.constant 0 : index
      %c0_107 = arith.constant 0 : index
      %196 = vector.load %arg35[%c0_106, %c0_107] : memref<8x1xf32, #tpu.memory_space<vmem>>, vector<8x1xf32>
      tpu.vector_store %arg35[%c0_106, %c0_107], %195 {strides = array<i32>} : memref<8x1xf32, #tpu.memory_space<vmem>>, vector<8x1xf32>,
      %cst_108 = arith.constant 0.000000e+00 : f32
      %197 = vector.broadcast %cst_108 : f32 to vector<8x1xf32>
      %c0_109 = arith.constant 0 : index
      %c0_110 = arith.constant 0 : index
      %198 = vector.load %arg36[%c0_109, %c0_110] : memref<8x1xf32, #tpu.memory_space<vmem>>, vector<8x1xf32>
      tpu.vector_store %arg36[%c0_109, %c0_110], %197 {strides = array<i32>} : memref<8x1xf32, #tpu.memory_space<vmem>>, vector<8x1xf32>,
    } else {
    }
    %c0 = arith.constant 0 : index
    %c0_2 = arith.constant 0 : index
    %5 = vector.load %arg30[%c0, %c0_2] : memref<8x32xf32, #tpu.memory_space<vmem>>, vector<8x32xf32>
    %6 = arith.truncf %5 : vector<8x32xf32> to vector<8x32xbf16>
    %c0_3 = arith.constant 0 : index
    %c0_4 = arith.constant 0 : index
    %7 = vector.load %arg28[%c0_3, %c0_4] : memref<32x128xbf16, #tpu.memory_space<vmem>>, vector<32x128xbf16>
    %cst = arith.constant dense<0.000000e+00> : vector<8x128xf32>
    %8 = tpu.matmul %6, %7, %cst {dimension_numbers = #tpu.dot_dimension_numbers<[1], [0], [0], [1], [0, 0, 1, 1], [], []>} : vector<8x32xbf16>, vector<32x128xbf16>, vector<8x128xf32> -> vector<8x128xf32>
    %9 = tpu.iota {dimensions = array<i32: 1>} : vector<8x128xi32>
    %c128_i32 = arith.constant 128 : i32
    %10 = arith.muli %arg2, %c128_i32 : i32
    %11 = vector.broadcast %10 : i32 to vector<8x128xi32>
    %12 = arith.addi %9, %11 : vector<8x128xi32>
    %c200_i32 = arith.constant 200 : i32
    %13 = vector.broadcast %c200_i32 : i32 to vector<8x128xi32>
    %14 = arith.cmpi slt, %12, %13 : vector<8x128xi32>
    %cst_5 = arith.constant -1.000000e+30 : f32
    %15 = vector.broadcast %cst_5 : f32 to vector<8x128xf32>
    %16 = arith.select %14, %8, %15 : vector<8x128xi1>, vector<8x128xf32>
    %c0_i32_6 = arith.constant 0 : i32
    %17 = arith.cmpi eq, %arg1, %c0_i32_6 : i32
    %18 = arith.extui %17 : i1 to i32
    %c0_i32_7 = arith.constant 0 : i32
    %19 = arith.cmpi ne, %18, %c0_i32_7 : i32
    scf.if %19 {
      %c0_9 = arith.constant 0 : index
      %c0_10 = arith.constant 0 : index
      %23 = vector.load %arg33[%c0_9, %c0_10] : memref<8x1xf32, #tpu.memory_space<vmem>>, vector<8x1xf32>
      %cst_11 = arith.constant dense<0xFF800000> : vector<8xf32>
      %24 = vector.multi_reduction <maximumf>, %16, %cst_11 [1] : vector<8x128xf32> to vector<8xf32>
      %25 = vector.shape_cast %24 : vector<8xf32> to vector<8x1xf32>
      %26 = arith.maximumf %23, %25 : vector<8x1xf32>
      %c0_12 = arith.constant 0 : index
      %c0_13 = arith.constant 0 : index
      %27 = vector.load %arg34[%c0_12, %c0_13] : memref<8x1xf32, #tpu.memory_space<vmem>>, vector<8x1xf32>
      %28 = arith.subf %23, %26 : vector<8x1xf32>
      %29 = math.exp %28 : vector<8x1xf32>
      %30 = arith.mulf %27, %29 : vector<8x1xf32>
      %31 = vector.broadcast %26 : vector<8x1xf32> to vector<8x128xf32>
      %32 = arith.subf %16, %31 : vector<8x128xf32>
      %33 = math.exp %32 : vector<8x128xf32>
      %cst_14 = arith.constant dense<0.000000e+00> : vector<8xf32>
      %34 = vector.multi_reduction <add>, %33, %cst_14 [1] : vector<8x128xf32> to vector<8xf32>
      %35 = vector.shape_cast %34 : vector<8xf32> to vector<8x1xf32>
      %36 = arith.addf %30, %35 : vector<8x1xf32>
      %c0_15 = arith.constant 0 : index
      %c0_16 = arith.constant 0 : index
      %37 = vector.load %arg34[%c0_15, %c0_16] : memref<8x1xf32, #tpu.memory_space<vmem>>, vector<8x1xf32>
      tpu.vector_store %arg34[%c0_15, %c0_16], %36 {strides = array<i32>} : memref<8x1xf32, #tpu.memory_space<vmem>>, vector<8x1xf32>,
      %c0_17 = arith.constant 0 : index
      %c0_18 = arith.constant 0 : index
      %38 = vector.load %arg33[%c0_17, %c0_18] : memref<8x1xf32, #tpu.memory_space<vmem>>, vector<8x1xf32>
      tpu.vector_store %arg33[%c0_17, %c0_18], %26 {strides = array<i32>} : memref<8x1xf32, #tpu.memory_space<vmem>>, vector<8x1xf32>,
    } else {
    }
    %c1_i32 = arith.constant 1 : i32
    %20 = arith.cmpi eq, %arg1, %c1_i32 : i32
    %21 = arith.extui %20 : i1 to i32
    %c0_i32_8 = arith.constant 0 : i32
    %22 = arith.cmpi ne, %21, %c0_i32_8 : i32
    scf.if %22 {
      %c0_9 = arith.constant 0 : index
      %c0_10 = arith.constant 0 : index
      %23 = vector.load %arg33[%c0_9, %c0_10] : memref<8x1xf32, #tpu.memory_space<vmem>>, vector<8x1xf32>
      %24 = vector.broadcast %23 : vector<8x1xf32> to vector<8x128xf32>
      %25 = arith.subf %16, %24 : vector<8x128xf32>
      %26 = math.exp %25 : vector<8x128xf32>
      %c0_11 = arith.constant 0 : index
      %c0_12 = arith.constant 0 : index
      %27 = vector.load %arg34[%c0_11, %c0_12] : memref<8x1xf32, #tpu.memory_space<vmem>>, vector<8x1xf32>
      %cst_13 = arith.constant 1.000000e+00 : f32
      %28 = vector.broadcast %cst_13 : f32 to vector<8x1xf32>
      %29 = arith.divf %28, %27 : vector<8x1xf32>
      %30 = vector.broadcast %29 : vector<8x1xf32> to vector<8x128xf32>
      %31 = arith.mulf %26, %30 : vector<8x128xf32>
      %c0_14 = arith.constant 0 : index
      %c0_15 = arith.constant 0 : index
      %32 = vector.load %arg32[%c0_14, %c0_15] : memref<8x1xf32, #tpu.memory_space<vmem>>, vector<8x1xf32>
      %33 = vector.broadcast %32 : vector<8x1xf32> to vector<8x128xf32>
      %34 = arith.mulf %33, %31 : vector<8x128xf32>
      %c0_16 = arith.constant 0 : index
      %c0_17 = arith.constant 0 : index
      %c0_18 = arith.constant 0 : index
      %35 = vector.load %arg7[%c0_16, %c0_17, %c0_18] : memref<1x8x1xi32, #tpu.memory_space<vmem>>, vector<1x8x1xi32>
      %36 = vector.shape_cast %35 : vector<1x8x1xi32> to vector<8x1xi32>
      %37 = tpu.iota {dimensions = array<i32: 1>} : vector<8x128xi32>
      %c128_i32_19 = arith.constant 128 : i32
      %38 = arith.muli %arg2, %c128_i32_19 : i32
      %39 = vector.broadcast %38 : i32 to vector<8x128xi32>
      %40 = arith.addi %37, %39 : vector<8x128xi32>
      %41 = vector.broadcast %36 : vector<8x1xi32> to vector<8x128xi32>
      %42 = arith.cmpi eq, %41, %40 : vector<8x128xi32>
      %43 = arith.extui %42 : vector<8x128xi1> to vector<8x128xi32>
      %44 = arith.sitofp %43 : vector<8x128xi32> to vector<8x128xf32>
      %c0_20 = arith.constant 0 : index
      %c0_21 = arith.constant 0 : index
      %45 = vector.load %arg31[%c0_20, %c0_21] : memref<8x8xf32, #tpu.memory_space<vmem>>, vector<8x8xf32>
      %cst_22 = arith.constant dense<0.000000e+00> : vector<8x128xf32>
      %46 = tpu.matmul %45, %44, %cst_22 {dimension_numbers = #tpu.dot_dimension_numbers<[1], [0], [0], [1], [0, 0, 1, 1], [], []>} : vector<8x8xf32>, vector<8x128xf32>, vector<8x128xf32> -> vector<8x128xf32>
      %47 = arith.addf %34, %46 : vector<8x128xf32>
      %cst_23 = arith.constant 9.99999996E-13 : f32
      %48 = vector.broadcast %cst_23 : f32 to vector<8x128xf32>
      %49 = arith.addf %47, %48 : vector<8x128xf32>
      %50 = math.log %49 : vector<8x128xf32>
      %c0_24 = arith.constant 0 : index
      %c0_25 = arith.constant 0 : index
      %c0_26 = arith.constant 0 : index
      %51 = vector.load %arg8[%c0_24, %c0_25, %c0_26] : memref<1x8x1xi32, #tpu.memory_space<vmem>>, vector<1x8x1xi32>
      %52 = vector.shape_cast %51 : vector<1x8x1xi32> to vector<8x1xi32>
      %53 = vector.broadcast %52 : vector<8x1xi32> to vector<8x128xi32>
      %54 = arith.cmpi eq, %53, %12 : vector<8x128xi32>
      %55 = arith.extui %54 : vector<8x128xi1> to vector<8x128xi32>
      %56 = arith.sitofp %55 : vector<8x128xi32> to vector<8x128xf32>
      %c0_27 = arith.constant 0 : index
      %c0_28 = arith.constant 0 : index
      %57 = vector.load %arg35[%c0_27, %c0_28] : memref<8x1xf32, #tpu.memory_space<vmem>>, vector<8x1xf32>
      %58 = arith.mulf %56, %50 : vector<8x128xf32>
      %cst_29 = arith.constant dense<0.000000e+00> : vector<8xf32>
      %59 = vector.multi_reduction <add>, %58, %cst_29 [1] : vector<8x128xf32> to vector<8xf32>
      %60 = vector.shape_cast %59 : vector<8xf32> to vector<8x1xf32>
      %61 = arith.addf %57, %60 : vector<8x1xf32>
      %c0_30 = arith.constant 0 : index
      %c0_31 = arith.constant 0 : index
      %62 = vector.load %arg35[%c0_30, %c0_31] : memref<8x1xf32, #tpu.memory_space<vmem>>, vector<8x1xf32>
      tpu.vector_store %arg35[%c0_30, %c0_31], %61 {strides = array<i32>} : memref<8x1xf32, #tpu.memory_space<vmem>>, vector<8x1xf32>,
      %c0_32 = arith.constant 0 : index
      %c0_33 = arith.constant 0 : index
      %63 = vector.load %arg36[%c0_32, %c0_33] : memref<8x1xf32, #tpu.memory_space<vmem>>, vector<8x1xf32>
      %cst_34 = arith.constant 0.000000e+00 : f32
      %64 = vector.broadcast %cst_34 : f32 to vector<8x128xf32>
      %65 = arith.select %14, %50, %64 : vector<8x128xi1>, vector<8x128xf32>
      %cst_35 = arith.constant dense<0.000000e+00> : vector<8xf32>
      %66 = vector.multi_reduction <add>, %65, %cst_35 [1] : vector<8x128xf32> to vector<8xf32>
      %67 = vector.shape_cast %66 : vector<8xf32> to vector<8x1xf32>
      %68 = arith.addf %63, %67 : vector<8x1xf32>
      %c0_36 = arith.constant 0 : index
      %c0_37 = arith.constant 0 : index
      %69 = vector.load %arg36[%c0_36, %c0_37] : memref<8x1xf32, #tpu.memory_space<vmem>>, vector<8x1xf32>
      tpu.vector_store %arg36[%c0_36, %c0_37], %68 {strides = array<i32>} : memref<8x1xf32, #tpu.memory_space<vmem>>, vector<8x1xf32>,
      %c1_i32_38 = arith.constant 1 : i32
      %70 = arith.cmpi eq, %arg2, %c1_i32_38 : i32
      %71 = arith.extui %70 : i1 to i32
      %c0_i32_39 = arith.constant 0 : i32
      %72 = arith.cmpi ne, %71, %c0_i32_39 : i32
      scf.if %72 {
        %c0_40 = arith.constant 0 : index
        %c0_41 = arith.constant 0 : index
        %73 = vector.load %arg35[%c0_40, %c0_41] : memref<8x1xf32, #tpu.memory_space<vmem>>, vector<8x1xf32>
        %c0_42 = arith.constant 0 : index
        %c0_43 = arith.constant 0 : index
        %74 = vector.load %arg36[%c0_42, %c0_43] : memref<8x1xf32, #tpu.memory_space<vmem>>, vector<8x1xf32>
        %75 = tpu.concatenate %73, %74 in 1 : vector<8x1xf32>, vector<8x1xf32> -> vector<8x2xf32>
        %c0_44 = arith.constant 0 : index
        %c0_45 = arith.constant 0 : index
        %c0_46 = arith.constant 0 : index
        %76 = vector.load %arg29[%c0_44, %c0_45, %c0_46] : memref<1x8x2xf32, #tpu.memory_space<vmem>>, vector<1x8x2xf32>
        %77 = vector.shape_cast %76 : vector<1x8x2xf32> to vector<8x2xf32>
        %78 = vector.shape_cast %75 : vector<8x2xf32> to vector<1x8x2xf32>
        tpu.vector_store %arg29[%c0_44, %c0_45, %c0_46], %78 {strides = array<i32>} : memref<1x8x2xf32, #tpu.memory_space<vmem>>, vector<1x8x2xf32>,
      } else {
      }
    } else {
    }
    return
  }
  func.func @transform_0(%arg0: i32, %arg1: i32, %arg2: i32) -> i32 {
    %c0_i32 = arith.constant 0 : i32
    %c0_i32_0 = arith.constant 0 : i32
    return %c0_i32 : i32
  }
  func.func @transform_1(%arg0: i32, %arg1: i32, %arg2: i32) -> (i32, i32, i32) {
    %c0_i32 = arith.constant 0 : i32
    %c0_i32_0 = arith.constant 0 : i32
    %c0_i32_1 = arith.constant 0 : i32
    return %arg0, %c0_i32, %c0_i32_0 : i32, i32, i32
  }
  func.func @transform_2(%arg0: i32, %arg1: i32, %arg2: i32) -> (i32, i32, i32) {
    %c0_i32 = arith.constant 0 : i32
    %c0_i32_0 = arith.constant 0 : i32
    %c0_i32_1 = arith.constant 0 : i32
    return %arg0, %c0_i32, %c0_i32_0 : i32, i32, i32
  }
  func.func @transform_3(%arg0: i32, %arg1: i32, %arg2: i32) -> (i32, i32, i32) {
    %c0_i32 = arith.constant 0 : i32
    %c0_i32_0 = arith.constant 0 : i32
    %c0_i32_1 = arith.constant 0 : i32
    return %arg0, %c0_i32, %c0_i32_0 : i32, i32, i32
  }
  func.func @transform_4(%arg0: i32, %arg1: i32, %arg2: i32) -> (i32, i32, i32) {
    %c0_i32 = arith.constant 0 : i32
    %c0_i32_0 = arith.constant 0 : i32
    %c0_i32_1 = arith.constant 0 : i32
    return %arg0, %c0_i32, %c0_i32_0 : i32, i32, i32
  }
  func.func @transform_5(%arg0: i32, %arg1: i32, %arg2: i32) -> (i32, i32, i32) {
    %c0_i32 = arith.constant 0 : i32
    %c0_i32_0 = arith.constant 0 : i32
    %c0_i32_1 = arith.constant 0 : i32
    return %arg0, %c0_i32, %c0_i32_0 : i32, i32, i32
  }
  func.func @transform_6(%arg0: i32, %arg1: i32, %arg2: i32) -> (i32, i32) {
    %c0_i32 = arith.constant 0 : i32
    %c0_i32_0 = arith.constant 0 : i32
    %c0_i32_1 = arith.constant 0 : i32
    return %c0_i32, %c0_i32_0 : i32, i32
  }
  func.func @transform_7(%arg0: i32, %arg1: i32, %arg2: i32) -> (i32, i32) {
    %c0_i32 = arith.constant 0 : i32
    %c0_i32_0 = arith.constant 0 : i32
    %c0_i32_1 = arith.constant 0 : i32
    return %c0_i32, %c0_i32_0 : i32, i32
  }
  func.func @transform_8(%arg0: i32, %arg1: i32, %arg2: i32) -> (i32, i32) {
    %c0_i32 = arith.constant 0 : i32
    %c0_i32_0 = arith.constant 0 : i32
    %c0_i32_1 = arith.constant 0 : i32
    return %c0_i32, %c0_i32_0 : i32, i32
  }
  func.func @transform_9(%arg0: i32, %arg1: i32, %arg2: i32) -> (i32, i32) {
    %c0_i32 = arith.constant 0 : i32
    %c0_i32_0 = arith.constant 0 : i32
    %c0_i32_1 = arith.constant 0 : i32
    return %c0_i32, %c0_i32_0 : i32, i32
  }
  func.func @transform_10(%arg0: i32, %arg1: i32, %arg2: i32) -> (i32, i32) {
    %c0_i32 = arith.constant 0 : i32
    %c0_i32_0 = arith.constant 0 : i32
    %c0_i32_1 = arith.constant 0 : i32
    return %c0_i32, %c0_i32_0 : i32, i32
  }
  func.func @transform_11(%arg0: i32, %arg1: i32, %arg2: i32) -> (i32, i32) {
    %c0_i32 = arith.constant 0 : i32
    %c0_i32_0 = arith.constant 0 : i32
    %c0_i32_1 = arith.constant 0 : i32
    return %c0_i32, %c0_i32_0 : i32, i32
  }
  func.func @transform_12(%arg0: i32, %arg1: i32, %arg2: i32) -> (i32, i32) {
    %c0_i32 = arith.constant 0 : i32
    %c0_i32_0 = arith.constant 0 : i32
    %c0_i32_1 = arith.constant 0 : i32
    return %c0_i32, %c0_i32_0 : i32, i32
  }
  func.func @transform_13(%arg0: i32, %arg1: i32, %arg2: i32) -> (i32, i32) {
    %c0_i32 = arith.constant 0 : i32
    %c0_i32_0 = arith.constant 0 : i32
    %c0_i32_1 = arith.constant 0 : i32
    return %c0_i32, %c0_i32_0 : i32, i32
  }
  func.func @transform_14(%arg0: i32, %arg1: i32, %arg2: i32) -> (i32, i32) {
    %c0_i32 = arith.constant 0 : i32
    %c0_i32_0 = arith.constant 0 : i32
    %c0_i32_1 = arith.constant 0 : i32
    return %c0_i32, %c0_i32_0 : i32, i32
  }
  func.func @transform_15(%arg0: i32, %arg1: i32, %arg2: i32) -> (i32, i32) {
    %c0_i32 = arith.constant 0 : i32
    %c0_i32_0 = arith.constant 0 : i32
    %c0_i32_1 = arith.constant 0 : i32
    return %c0_i32, %c0_i32_0 : i32, i32
  }
  func.func @transform_16(%arg0: i32, %arg1: i32, %arg2: i32) -> (i32, i32) {
    %c0_i32 = arith.constant 0 : i32
    %c0_i32_0 = arith.constant 0 : i32
    %c0_i32_1 = arith.constant 0 : i32
    return %c0_i32, %c0_i32_0 : i32, i32
  }
  func.func @transform_17(%arg0: i32, %arg1: i32, %arg2: i32) -> (i32, i32) {
    %c0_i32 = arith.constant 0 : i32
    %c0_i32_0 = arith.constant 0 : i32
    %c0_i32_1 = arith.constant 0 : i32
    return %c0_i32, %c0_i32_0 : i32, i32
  }
  func.func @transform_18(%arg0: i32, %arg1: i32, %arg2: i32) -> (i32, i32) {
    %c0_i32 = arith.constant 0 : i32
    %c0_i32_0 = arith.constant 0 : i32
    %c0_i32_1 = arith.constant 0 : i32
    return %c0_i32, %c0_i32_0 : i32, i32
  }
  func.func @transform_19(%arg0: i32, %arg1: i32, %arg2: i32) -> (i32, i32) {
    %c0_i32 = arith.constant 0 : i32
    %c0_i32_0 = arith.constant 0 : i32
    %c0_i32_1 = arith.constant 0 : i32
    return %c0_i32, %c0_i32_0 : i32, i32
  }
  func.func @transform_20(%arg0: i32, %arg1: i32, %arg2: i32) -> (i32, i32) {
    %c0_i32 = arith.constant 0 : i32
    %c0_i32_0 = arith.constant 0 : i32
    %c0_i32_1 = arith.constant 0 : i32
    return %c0_i32, %c0_i32_0 : i32, i32
  }
  func.func @transform_21(%arg0: i32, %arg1: i32, %arg2: i32) -> (i32, i32) {
    %c0_i32 = arith.constant 0 : i32
    %c0_i32_0 = arith.constant 0 : i32
    %c0_i32_1 = arith.constant 0 : i32
    return %c0_i32, %c0_i32_0 : i32, i32
  }
  func.func @transform_22(%arg0: i32, %arg1: i32, %arg2: i32) -> (i32, i32) {
    %c0_i32 = arith.constant 0 : i32
    %c0_i32_0 = arith.constant 0 : i32
    %c0_i32_1 = arith.constant 0 : i32
    return %c0_i32, %c0_i32_0 : i32, i32
  }
  func.func @transform_23(%arg0: i32, %arg1: i32, %arg2: i32) -> (i32, i32) {
    %c0_i32 = arith.constant 0 : i32
    %c0_i32_0 = arith.constant 0 : i32
    %c0_i32_1 = arith.constant 0 : i32
    return %c0_i32, %c0_i32_0 : i32, i32
  }
  func.func @transform_24(%arg0: i32, %arg1: i32, %arg2: i32) -> (i32, i32) {
    %c0_i32 = arith.constant 0 : i32
    %c0_i32_0 = arith.constant 0 : i32
    %c0_i32_1 = arith.constant 0 : i32
    return %c0_i32, %c0_i32_0 : i32, i32
  }
  func.func @transform_25(%arg0: i32, %arg1: i32, %arg2: i32) -> (i32, i32) {
    %c0_i32 = arith.constant 0 : i32
    %c0_i32_0 = arith.constant 0 : i32
    return %c0_i32, %arg2 : i32, i32
  }
  func.func @transform_26(%arg0: i32, %arg1: i32, %arg2: i32) -> (i32, i32, i32) {
    %c0_i32 = arith.constant 0 : i32
    %c0_i32_0 = arith.constant 0 : i32
    %c0_i32_1 = arith.constant 0 : i32
    return %arg0, %c0_i32, %c0_i32_0 : i32, i32, i32
  }
}

</mosaic_0001>

<bundles_post_ra>
// kernel: seq2seq_forward.4
= control target key start
LH: loop header
LB: loop body
LE: loop exit
PB: predicated region body
PF: predicated region fallthrough
CT: control target
= control target key end

     0   :  { %s326_s9 = smov 0   ;;  %s352_s0 = inlined_call_operand.vmem [shape: f32[2,8,32], index: 0, kind: input, shape index: {}]   ;;  %s353_s1 = inlined_call_operand.vmem [shape: f32[2,8,1], index: 1, kind: input, shape index: {}]   ;;  %s354_s2 = inlined_call_operand.vmem [shape: f32[2,1,32], index: 2, kind: output, shape index: {}]  }
   0x1 LB: > { %s269_s10 = sadd.s32 4294967295, %s307_s9   ;;  %p273_p0 = scmp.ge.s32.totalorder %s307_s9, 1  ;;  %s307_s9 = sphi %s326_s9, %s12_s9  }
   0x2   : > { %p120_p1 = scmp.lt.s32.totalorder %s307_s9, 3 }
   0x4   : > { %p121_p2 = pnand %p273_p0, %p120_p1 }
   0x5   : > { %p143_p3 = scmp.lt.s32.totalorder (!%p121_p2), %s269_s10, 1  ;;  %v309_v0 = vmov (!%p121_p2), 0   ;;  %vm170_vm0 = vcmask (!%p121_p2), 7168   ;;  %vm162_vm1 = vcmask (!%p121_p2), 261120   ;;  %vm185_vm2 = vcmask (!%p121_p2), 253952  }
   0x6   : > { %124 = sbr.rel (%p121_p2) target bundleno = 525 (0x20d), region = 28  ;;  %294 = vset.pattern.permute.xlu0 (!%p121_p2), %v309_v0  ;;  %s310_s21 = smov (!%p121_p2), 1e-12  }
   0xd   : > { %s356_s10 = smov (!%p143_p3, %s269_s10), 1 }
   0xe   : > { %s274_s11 = sshll.u32 %s356_s10, 3  ;;  %s153_s25 = scalar_lea.vmem %s354_s2, %s356_s10 }
   0xf   : > { %s150_s14 = scalar_lea.vmem %s353_s1, %s274_s11  ;;  %s146_s17 = scalar_lea.vmem %s352_s0, %s274_s11 }
  0x10   : > { %v155_v1 = vld [vmem:[%s150_s14] sm:$0xff] }
  0x11   : > { %v171_v2 = vsel %vm170_vm0, %v155_v1, 0.0  ;;  %v154_v11 = vld [vmem:[%s146_s17] sm:$0xff] }
  0x12   : > { %172 = vadd.xlane.f32.xlu0 %v171_v2 }
  0x28   : > { %158 = vperm.xlu0 %294, %v155_v1  }
  0x9f   : > { %v173_v3 = vpop.xlane.xlu0 %172 }
  0xa0   : > { %v174_v4 = vrot.slane %v173_v3, 4 }
  0xa2   : > { %v175_v5 = vadd.f32 %v174_v4, %v173_v3 }
  0xa4   : > { %v176_v6 = vrot.slane %v175_v5, 2 }
  0xa6   : > { %v177_v7 = vadd.f32 %v176_v6, %v175_v5 }
  0xa7   : > { %v159_v10 = vpop.permute.xlu0 %158 }
  0xa8   : > { %v178_v8 = vrot.slane %v177_v7, 1  ;;  %v161_v12 = vmul.f32 %v159_v10, %v154_v11 }
  0xaa   : > { %v179_v9 = vadd.f32 %v178_v8, %v177_v7  ;;  %v163_v13 = vsel %vm162_vm1, %v161_v12, 0.0 }
  0xab   : > { %v164_v14 = vrot.slane %v163_v13, 4 }
  0xac   : > { %278 = vpush %v179_v9 }
  0xad   : > { %v165_v15 = vadd.f32 %v164_v14, %v163_v13 }
  0xaf   : > { %v166_v16 = vrot.slane %v165_v15, 2 }
  0xb1   : > { %v167_v18 = vadd.f32 %v166_v16, %v165_v15 }
  0xb3   : > { %v168_v19 = vrot.slane %v167_v18, 1 }
  0xb5   : > { %v169_v20 = vadd.f32 %v168_v19, %v167_v18 }
  0xdd   : > { %s279_s18 = spop %278 }
  0xde   : > { %v181_v17 = vstv %s279_s18 }
  0xdf   : > { %295 = vrcp.f32 %v181_v17 }
  0xe9   : > { %v296_v21 = vpop.eup %295 }
  0xea   : > { %v183_v22 = vmul.f32 %v296_v21, %v169_v20 }
  0xec   : > { %v184_v23 = vmul.f32 %v183_v22, %v183_v22 }
  0xee   : > { %v186_v24 = vsel %vm185_vm2, %v184_v23, 0.0 }
  0xef   : > { %187 = vadd.xlane.f32.xlu1 %v186_v24 }
 0x17c   : > { %v188_v25 = vpop.xlane.xlu1 %187 }
 0x17d   : > { %v189_v26 = vrot.slane %v188_v25, 4 }
 0x17f   : > { %v190_v27 = vadd.f32 %v189_v26, %v188_v25 }
 0x181   : > { %v191_v28 = vrot.slane %v190_v27, 2 }
 0x183   : > { %v192_v29 = vadd.f32 %v191_v28, %v190_v27 }
 0x185   : > { %v193_v30 = vrot.slane %v192_v29, 1 }
 0x187   : > { %v194_v31 = vadd.f32 %v193_v30, %v192_v29 }
 0x189   : > { %280 = vpush %v194_v31 }
 0x1ba   : > { %s281_s19 = spop %280 }
 0x1bb   : > { %v196_v32 = vstv %s281_s19 }
 0x1bc   : > { %297 = vrsqrt.f32 %v196_v32  ;;  %vm199_vm3 = vcmp.eq.f32.partialorder %v196_v32, inf  ;;  %v202_v35 = vand.u32 2147483648, %v196_v32  ;;  %vm201_vm4 = vcmp.eq.f32.partialorder %v196_v32, 0.0 }
 0x1c6   : > { %v298_v33 = vpop.eup %297 }
 0x1c7   : > { %v198_v34 = vmul.f32 %v298_v33, %v196_v32 }
 0x1c9   : > { %v200_v36 = vsel %vm199_vm3, %v196_v32, %v198_v34 }
 0x1ca   : > { %v203_v37 = vsel %vm201_vm4, %v202_v35, %v200_v36 }
 0x1cb   : > { %282 = vpush %v203_v37 }
 0x1fc   : > { %s283_s20 = spop %282 }
 0x1fd   : > { %s205_s22 = smax.f32 %s310_s21, %s283_s20 }
 0x1fe   : > { %v206_v38 = vstv %s205_s22 }
 0x1ff   : > { %299 = vrcp.f32 %v206_v38 }
 0x209   : > { %v300_v39 = vpop.eup %299 }
 0x20a   : > { %v208_v40 = vmul.f32 %v300_v39, %v183_v22 }
 0x20c   : > { %209 = vst.msk [vmem:[%s153_s25] sm:$0x1] %vm185_vm2, %v208_v40 }
 0x20d PF: > { %s12_s9 = sadd.s32 1, %s307_s9  }
 0x20e   : > { %p9_p4 = scmp.ge.s32.totalorder %s12_s9, 4  }
 0x210   :  { %11 = sbr.rel (!%p9_p4) target bundleno = 1 (0x1), region = 61 }

// kernel: seq2seq_forward.6
= control target key start
LH: loop header
LB: loop body
LE: loop exit
PB: predicated region body
PF: predicated region fallthrough
CT: control target
= control target key end

     0   :  { %s3145_s0 = inlined_call_operand.vmem [shape: f32[2], index: 0, kind: input, shape index: {}]   ;;  %s3146_s1 = inlined_call_operand.vmem [shape: bf16[2,8,32], index: 1, kind: input, shape index: {}]   ;;  %s3147_s2 = inlined_call_operand.vmem [shape: bf16[2,8,32], index: 2, kind: input, shape index: {}]   ;;  %s3148_s3 = inlined_call_operand.vmem [shape: f32[2,1,8], index: 3, kind: input, shape index: {}]   ;;  %s3149_s4 = inlined_call_operand.vmem [shape: s32[2,8,1], index: 4, kind: input, shape index: {}]   ;;  %s3150_s5 = inlined_call_operand.vmem [shape: s32[2,8,1], index: 5, kind: input, shape index: {}]   ;;  %s3151_s6 = inlined_call_operand.vmem [shape: bf16[32,32], index: 6, kind: input, shape index: {}]   ;;  %s3152_s7 = inlined_call_operand.vmem [shape: bf16[32,32], index: 7, kind: input, shape index: {}]   ;;  %s3153_s8 = inlined_call_operand.vmem [shape: bf16[32,32], index: 8, kind: input, shape index: {}]   ;;  %s3154_s9 = inlined_call_operand.vmem [shape: f32[1,32], index: 9, kind: input, shape index: {}]   ;;  %s3155_s10 = inlined_call_operand.vmem [shape: f32[1,32], index: 10, kind: input, shape index: {}]   ;;  %s3156_s11 = inlined_call_operand.vmem [shape: f32[1,32], index: 11, kind: input, shape index: {}]   ;;  %s3157_s12 = inlined_call_operand.vmem [shape: bf16[32,32], index: 12, kind: input, shape index: {}]   ;;  %s3158_s13 = inlined_call_operand.vmem [shape: f32[1,32], index: 13, kind: input, shape index: {}]   ;;  %s3159_s14 = inlined_call_operand.vmem [shape: f32[1,32], index: 14, kind: input, shape index: {}]   ;;  %s3160_s15 = inlined_call_operand.vmem [shape: f32[1,32], index: 15, kind: input, shape index: {}]   ;;  %s3161_s16 = inlined_call_operand.vmem [shape: bf16[32,64], index: 16, kind: input, shape index: {}]   ;;  %s3162_s17 = inlined_call_operand.vmem [shape: f32[1,64], index: 17, kind: input, shape index: {}]   ;;  %s3163_s18 = inlined_call_operand.vmem [shape: bf16[64,32], index: 18, kind: input, shape index: {}]   ;;  %s3164_s19 = inlined_call_operand.vmem [shape: f32[1,32], index: 19, kind: input, shape index: {}]   ;;  %s3165_s20 = inlined_call_operand.vmem [shape: f32[1,32], index: 20, kind: input, shape index: {}]   ;;  %s3166_s21 = inlined_call_operand.vmem [shape: f32[1,32], index: 21, kind: input, shape index: {}]   ;;  %s3167_s22 = inlined_call_operand.vmem [shape: f32[32,2], index: 22, kind: input, shape index: {}]   ;;  %s3168_s23 = inlined_call_operand.vmem [shape: f32[32,2], index: 23, kind: input, shape index: {}]   ;;  %s3169_s24 = inlined_call_operand.vmem [shape: f32[1,2], index: 24, kind: input, shape index: {}]   ;;  %s3170_s25 = inlined_call_operand.vmem [shape: bf16[32,256], index: 25, kind: input, shape index: {}]   ;;  %s3171_s26 = inlined_call_operand.vmem [shape: f32[2,8,2], index: 26, kind: output, shape index: {}]  }
   0x1   :  { %3185 = sst [smem:[#allocation25_spill]] %s3145_s0 }
   0x2   :  { %3186 = sst [smem:[#allocation26_spill]] %s3146_s1 }
   0x3   :  { %3187 = sst [smem:[#allocation27_spill]] %s3147_s2 }
   0x4   :  { %3188 = sst [smem:[#allocation28_spill]] %s3148_s3 }
   0x5   :  { %3189 = sst [smem:[#allocation29_spill]] %s3149_s4 }
   0x6   :  { %3190 = sst [smem:[#allocation30_spill]] %s3150_s5 }
   0x7   :  { %3191 = sst [smem:[#allocation31_spill]] %s3151_s6 }
   0x8   :  { %3192 = sst [smem:[#allocation32_spill]] %s3152_s7 }
   0x9   :  { %3193 = sst [smem:[#allocation33_spill]] %s3153_s8 }
   0xa   :  { %3194 = sst [smem:[#allocation34_spill]] %s3154_s9 }
   0xb   :  { %3195 = sst [smem:[#allocation35_spill]] %s3155_s10 }
   0xc   :  { %3196 = sst [smem:[#allocation36_spill]] %s3162_s17 }
   0xd   :  { %3197 = sst [smem:[#allocation37_spill]] %s3164_s19 }
   0xe   :  { %3198 = sst [smem:[#allocation38_spill]] %s3165_s20 }
   0xf   :  { %3199 = sst [smem:[#allocation39_spill]] %s3166_s21 }
  0x10   :  { %3200 = sst [smem:[#allocation40_spill]] %s3169_s24 }
  0x11   :  { %3201 = sst [smem:[#allocation41_spill]] %s3170_s25 }
  0x12   :  { %31 = vsyncpa [#allocation10], 0  ;;  %s2767_s27 = smov 0   ;;  %s2769_s3 = smov 0  }
  0x13   :  { %s2771_s7 = smov 0   ;;  %s2773_s28 = smov 0  }
  0x14   :  { %s2775_s8 = smov 0   ;;  %s2777_s4 = smov 0  }
  0x15   :  { %s2779_s29 = smov 0   ;;  %s2781_s0 = smov 0  }
  0x16   :  { %s2783_s9 = smov 0  }
  0x17 LB: > { %3202 = sst [smem:[#allocation13_spill]] %s2587_s3  ;;  %s2170_s30 = sadd.s32 4294967295, %s2615_s9   ;;  %s2615_s9 = sphi %s2783_s9, %s37_s9   ;;  %s2611_s0 = sphi %s2781_s0, %s3256_s0   ;;  %s2607_s29 = sphi %s2779_s29, %s3255_s29   ;;  %s2603_s4 = sphi %s2777_s4, %s3254_s4   ;;  %s2599_s8 = sphi %s2775_s8, %s3253_s8   ;;  %s2595_s28 = sphi %s2773_s28, %s3252_s28   ;;  %s2591_s7 = sphi %s2771_s7, %s3251_s7   ;;  %s2587_s3 = sphi %s2769_s3, %s3250_s3   ;;  %s2583_s27 = sphi %s2767_s27, %s3249_s27  }
  0x18   : > { %3203 = sst [smem:[#allocation14_spill]] %s2591_s7  ;;  %s49_s2 = sadd.s32 1, %s2603_s4 }
  0x19   : > { %3204 = sst [smem:[#allocation15_spill]] %s2595_s28  ;;  %p50_p0 = scmp.ge.s32.totalorder %s49_s2, 2 }
  0x1a   : > { %3205 = sst [smem:[#allocation16_spill]] %s2603_s4  ;;  %s52_s5 = sadd.s32 1, %s2607_s29 }
  0x1b   : > { %3206 = sst [smem:[#allocation17_spill]] %s2607_s29  ;;  %s56_s10 = sadd.s32 1, %s2611_s0 }
  0x1c   : > { %3207 = sst [smem:[#allocation18_spill]] %s2611_s0  ;;  %s613_s6 = sadd.s32 1, %s2587_s3 }
  0x1d   : > { %3208 = sst [smem:[#allocation19_spill]] %s2615_s9  ;;  %s3258_s2 = smov (%p50_p0, %s49_s2), 0 }
  0x1e   : > { %3209 = sst [smem:[#allocation20_spill]] %s3258_s2  ;;  %s3260_s5 = smov (!%p50_p0, %s52_s5), %s2607_s29 }
  0x1f   : > { %s610_s1 = ssub.s32 %s2603_s4, %s3258_s2  ;;  %p620_p1 = scmp.ne.s32.totalorder %s2587_s3, %s2583_s27 }
  0x20   : > { %p54_p2 = scmp.ge.s32.totalorder %s3260_s5, 2  ;;  %p611_p3 = scmp.eq.s32.totalorder %s610_s1, 0 }
  0x21   : > { %p621_p4 = scmp.eq.s32.totalorder %s2615_s9, 0  ;;  %p2172_p5 = scmp.ge.s32.totalorder %s2615_s9, 1 }
  0x22   : > { %s3262_s5 = smov (%p54_p2, %s3260_s5), 0  ;;  %s3264_s10 = smov (!%p54_p2, %s56_s10), %s2611_s0 }
  0x23   : > { %3210 = sst [smem:[#allocation21_spill]] %s3262_s5  ;;  %p58_p6 = scmp.ge.s32.totalorder %s3264_s10, 2 }
  0x24   : > { %s2830_s21 = scalar_select %p611_p3, %s2587_s3, %s613_s6  }
  0x25   : > { %p2832_p7 = por %p621_p4, %p620_p1  ;;  %p663_p8 = scmp.lt.s32.totalorder %s2615_s9, 9 }
  0x26   : > { %3211 = sst [smem:[#allocation22_spill]] %s2830_s21  ;;  %s3266_s10 = smov (%p58_p6, %s3264_s10), 0 }
  0x27   : > { %3213 = sst [smem:[#allocation23_spill]] %s3266_s10  ;;  %p2839_p9 = pnand %p2172_p5, %p663_p8 }
  0x28   : > { %p2843_p10 = scmp.eq.s32.totalorder %s2170_s30, 0  ;;  %s3216_s0 = sld [smem:[#allocation25_spill]] }
  0x29   : > { %p2389_p11 = pneg %p2839_p9 }
  0x2b   : > { %p2390_p12 = pnand %p2843_p10, %p2389_p11 }
  0x2d   : > { %p2528_p0 = pneg %p2390_p12 }
  0x2e   : > { %s676_s29 = sshll.u32 %s3216_s0, 4  ;;  %s677_s29 = int_to_ptr.vmem [resolvable:$true] %s676_s29 }
  0x2f   : > { %s2526_s10 = scalar_lea.vmem %s677_s29, 16  ;;  %p2534_p3 = scmp.lt.s32.totalorder %s677_s29, %s677_s29 }
  0x30   : > { %p2527_p13 = scmp.ne.s32.totalorder %s677_s29, %s2526_s10  ;;  %p2535_p4 = scmp.lt.s32.totalorder %s2526_s10, %s2526_s10 }
  0x32   : > { %p2529_p1 = pnand %p2528_p0, %p2527_p13  ;;  %p2536_p5 = por %p2535_p4, %p2534_p3 }
  0x34   : > { %p2530_p2 = pneg %p2529_p1 }
  0x36   : > { %p2537_p6 = pnand %p2536_p5, %p2530_p2 }
  0x38   : > { %2540 = shalt.err (!%p2537_p6)
}
  0x39   : > { %s2617_s30 = smov [#allocation9]   ;;  %p2174_p8 = scmp.ge.s32.totalorder %s2615_s9, 8 }
  0x3a   : > { %2392 = dma.vmem_to_smem (!%p2390_p12), %s677_s29, 16, %s2617_s30, [#allocation10]  }
  0x3b   : > { %740 = sbr.rel (%p2174_p8) target bundleno = 78 (0x4e), region = 96 }
  0x42   : > { %777 = sbr.rel (!%p2832_p7) target bundleno = 78 (0x4e), region = 120  ;;  %s779_s0 = sand.u32 (%p2832_p7), 1, %s2587_s3  }
  0x43   : > { %s2176_s5 = sshll.u32 (%p2832_p7), %s2603_s4, 2  ;;  %s2175_s6 = sshll.u32 (%p2832_p7), %s779_s0, 4 }
  0x44   : > { %s3217_s25 = sld [smem:[#allocation41_spill]] (%p2832_p7)  ;;  %s781_s17 = scalar_lea.vmem (%p2832_p7), [#allocation11], %s2175_s6 }
  0x4a   : > { %s783_s10 = scalar_lea.vmem %s3217_s25, %s2176_s5 }
  0x4b   : > { %v799_v0 = vld [vmem:[%s783_s10] sm:$0xf]  ;;  %v801_v1 = vld [vmem:[%s783_s10 + $0x8] sm:$0xf]  ;;  %v803_v2 = vld [vmem:[%s783_s10 + $0x10] sm:$0xf] }
  0x4c   : > { %800 = vst [vmem:[%s781_s17] sm:$0xf] %v799_v0  ;;  %802 = vst [vmem:[%s781_s17 + $0x4] sm:$0xf] %v801_v1  ;;  %v805_v3 = vld [vmem:[%s783_s10 + $0x18] sm:$0xf] }
  0x4d   : > { %804 = vst [vmem:[%s781_s17 + $0x8] sm:$0xf] %v803_v2  ;;  %806 = vst [vmem:[%s781_s17 + $0xc] sm:$0xf] %v805_v3 }
  0x4e PF: > { %840 = sbr.rel (%p2839_p9) target bundleno = 3661 (0xe4d), region = 161 }
  0x55   : > { %2578 = dma.done.wait (%p2843_p10), [#allocation10], 16  }
  0x56   : > { %2580 = vsyncadd (%p2843_p10), [#allocation10], 4294967280  ;;  %s847_s19 = sand.u32 1, %s2583_s27  }
  0x57   : > { %s2869_s20 = sshll.u32 %s847_s19, 4 }
  0x58   : > { %3218 = sst [smem:[#allocation24_spill]] %s2869_s20 }
  0x59   : > { %853 = sfence }
  0x5a   : > { %p935_p7 = scmp.lt.s32.totalorder %s2599_s8, 1  ;;  %p959_p11 = scmp.eq.s32.totalorder %s2595_s28, 0 }
  0x5b   : > { %p960_p9 = scmp.eq.s32.totalorder %s2591_s7, 0  ;;  %s3220_s6 = sld [smem:[#allocation26_spill]] }
  0x5c   : > { %s2876_s17 = scalar_select %p935_p7, %s2599_s8, 1 }
  0x5d   : > { %p961_p10 = pnand %p960_p9, %p959_p11  ;;  %s3221_s25 = sld [smem:[#allocation27_spill]] }
  0x5e   : > { %s2180_s29 = sshll.u32 %s2876_s17, 2  ;;  %s2890_s3 = sshll.u32 %s2876_s17, 3  ;;  %v2618_v5 = vmov (!%p961_p10), 0.0   ;;  %vm2619_vm0 = vmmov (!%p961_p10), 0   ;;  %vm991_vm1 = vcmask (!%p961_p10), 261120   ;;  %v1218_v29 = vlaneseq (!%p961_p10)  ;;  %v2489_v57 = vld [vmem:[%s3157_s12] sm:$0xff] (!%p961_p10)  }
  0x5f   : > { %s3222_s7 = sld [smem:[#allocation29_spill]]  ;;  %s3223_s2 = sld [smem:[#allocation30_spill]]  ;;  %2282 = vmatprep.subr.bf16.mxu1 (!%p961_p10), %v2618_v5  ;;  %2274 = vmatprep.subr.bf16.mxu0 (!%p961_p10), %v2618_v5  ;;  %v2620_v33 = vmov (!%p961_p10), 0   ;;  %vm1224_vm4 = vcmask (!%p961_p10), 64512   ;;  %v2193_v52 = vld [vmem:[%s3156_s11] ss:$0 sm:$0xff] (!%p961_p10) }
  0x60   : > { %s957_s5 = scalar_lea.vmem %s3171_s26, %s2890_s3  ;;  %964 = sbr.rel (%p961_p10) target bundleno = 2363 (0x93b), region = 173  ;;  %2286 = vmatprep.mubr.msk.bf16.mxu1 (!%p961_p10), %vm2619_vm0, %v2618_v5  ;;  %2278 = vmatprep.mubr.msk.bf16.mxu0 (!%p961_p10), %vm2619_vm0, %v2618_v5  ;;  %v1219_v31 = vshrl.u32 (!%p961_p10), %v1218_v29, 7  ;;  %vm1241_vm5 = vcmask (!%p961_p10), 1043456   ;;  %v2490_v62 = vld [vmem:[%s3157_s12 + $0x8] sm:$0xff] (!%p961_p10)   ;;  %vm1544_vm6 = vcmask (!%p961_p10), 15360   ;;  %vm1703_vm7 = vcmask (!%p961_p10), 523264  }
  0x61   : > { %s938_s10 = scalar_lea.vmem %s3220_s6, %s2180_s29  ;;  %s3226_s9 = sld [smem:[#allocation31_spill]] (!%p961_p10)  ;;  %v1383_v29 = vld [vmem:[%s3167_s22 + $0x8] sm:$0xff] (!%p961_p10)  ;;  %vm1556_vm8 = vcmask (!%p961_p10), 7168  }
  0x62   : > { %v2924_v10 = vld [vmem:[%s938_s10] sm:$0xf] (!%p961_p10)  ;;  %s3228_s0 = sld [smem:[#allocation35_spill]] (!%p961_p10)  ;;  %s3232_s10 = sld [smem:[#allocation28_spill]] (!%p961_p10)  ;;  %v1220_v32 = vsub.s32 (!%p961_p10), 0, %v1219_v31  ;;  %1778 = vst.msk [vmem:[#allocation6] sm:$0xff] (!%p961_p10), %vm1556_vm8, %v2618_v5 }
  0x63   : > { %s942_s4 = scalar_lea.vmem %s3221_s25, %s2180_s29  ;;  %s3224_s29 = sld [smem:[#allocation32_spill]] (!%p961_p10)  ;;  %1779 = vst.msk [vmem:[#allocation7] sm:$0xff] (!%p961_p10), %vm1556_vm8, %v2618_v5  ;;  %1780 = vst.msk [vmem:[#allocation8] sm:$0xff] (!%p961_p10), %vm1556_vm8, %v2618_v5 }
  0x64   : > { %v966_v8 = vld [vmem:[%s942_s4] sm:$0xf] (!%p961_p10)  ;;  %s1167_s21 = sld [smem:[#allocation9 + %s2599_s8]] (!%p961_p10) }
  0x65   : > { %s949_s20 = scalar_lea.vmem %s3222_s7, %s2890_s3  ;;  %s953_s1 = scalar_lea.vmem %s3223_s2, %s2890_s3 }
  0x66   : > { %s3234_s8 = sld [smem:[#allocation40_spill]] (!%p961_p10)  ;;  %s3237_s2 = sld [smem:[#allocation38_spill]] (!%p961_p10) }
  0x67   : > { %s3227_s19 = smov %s3226_s9  ;;  %v2484_v6 = vld [vmem:[%s3226_s9] sm:$0xff]   ;;  %s3230_s9 = sld [smem:[#allocation33_spill]] }
  0x68   : > { %2275 = vmatpush3.bf16.msra.mxu0 %v2484_v6  ;;  %v2486_v9 = vld [vmem:[%s3227_s19 + $0x8] sm:$0xff]   ;;  %v2189_v11 = vld [vmem:[%s3228_s0] ss:$0 sm:$0xff]  ;;  %s3233_s0 = scalar_lea.vmem %s3232_s10, %s2876_s17  ;;  %v967_v6 = vunpack.c.l.bf16 %v2924_v10 }
  0x69   : > { %s3225_s6 = smov %s3224_s29  ;;  %v2483_v4 = vld [vmem:[%s3224_s29] sm:$0xff]   ;;  %2276 = vmatprep.subr.bf16.mxu0 %v2618_v5  ;;  %s3229_s29 = sld [smem:[#allocation34_spill]] }
  0x6a   : > { %2283 = vmatpush3.bf16.msra.mxu1 %v2483_v4  ;;  %v2485_v7 = vld [vmem:[%s3225_s6 + $0x8] sm:$0xff]   ;;  %v1215_v30 = vld [vmem:[%s3233_s0] sm:$0x1]  ;;  %v1168_v36 = vstv %s1167_s21  ;;  %s3238_s0 = sld [smem:[#allocation39_spill]] }
  0x6b   : > { %2284 = vmatprep.subr.bf16.mxu1 %v2618_v5  ;;  %vm1216_vm2 = vcmp.gt.f32.partialorder %v1215_v30, 0.5  ;;  %v2199_v4 = vld [vmem:[%s3158_s13] ss:$0 sm:$0xff]  ;;  %v2621_v30 = vmov 0.0|0.0  }
  0x6c   : > { %2277 = vmatpush3.bf16.msra.mxu0 %v2486_v9  ;;  %v1217_v34 = vsel %vm1216_vm2, 1, %v2620_v33  ;;  %v1389_v33 = vld [vmem:[%s3168_s23 + $0x18] sm:$0xff] }
  0x6d   : > { %2290 = vmatprep.subr.bf16.mxu0 %v2618_v5  ;;  %s3231_s24 = smov %s3230_s9  ;;  %v2487_v27 = vld [vmem:[%s3230_s9] sm:$0xff]   ;;  %v1221_v35 = vrot.slane %v1217_v34, %v1220_v32  ;;  %v1388_v32 = vld [vmem:[%s3168_s23 + $0x10] sm:$0xff]  ;;  %s3236_s9 = sld [smem:[#allocation37_spill]] }
  0x6e   : > { %2285 = vmatpush3.bf16.msra.mxu1 %v2485_v7  ;;  %v2488_v28 = vld [vmem:[%s3231_s24 + $0x8] sm:$0xff]   ;;  %v2377_v34 = vpack.c.bf16 %v1389_v33, %v1388_v32 }
  0x6f   : > { %2298 = vmatprep.subr.bf16.mxu1 %v2618_v5  ;;  %2279 = vmatmul.mubr.msk.bf16.vlgmr.msra.gmra.mrb[0].mxu0 %vm991_vm1, %v2924_v10  ;;  %v2185_v12 = vld [vmem:[%s3229_s29] ss:$0 sm:$0xff]  ;;  %vm1222_vm3 = vcmp.eq.s32.totalorder %v1221_v35, 1  ;;  %v1384_v35 = vld [vmem:[%s3167_s22 + $0x10] sm:$0xff]  ;;  %s3235_s29 = sld [smem:[#allocation36_spill]] }
  0x70   : > { %2294 = vmatprep.mubr.msk.bf16.mxu0 %vm2619_vm0, %v2618_v5  ;;  %2291 = vmatpush3.bf16.msra.mxu0 %v2487_v27 }
  0x71   : > { %2287 = vmatmul.mubr.msk.bf16.vlgmr.msra.gmra.mrb[0].mxu1 %vm991_vm1, %v966_v8  ;;  %2292 = vmatprep.subr.bf16.mxu0 %v2618_v5 }
  0x72   : > { %2300 = vmatprep.mubr.msk.bf16.mxu1 %vm2619_vm0, %v2618_v5 }
  0x74   : > { %2293 = vmatpush3.bf16.msra.mxu0 %v2488_v28  ;;  %v1382_v28 = vld [vmem:[%s3167_s22] sm:$0xff] }
  0x75   : > { %2304 = vmatprep.subr.bf16.mxu0 %v2618_v5  ;;  %v2380_v31 = vpack.c.bf16 %v1383_v29, %v1382_v28 }
  0x77   : > { %2295 = vmatmul.mubr.msk.bf16.vlgmr.msra.gmra.mrb[4].mxu0 %vm991_vm1, %v966_v8 }
  0x78   : > { %2306 = vmatprep.mubr.msk.bf16.mxu0 %vm2619_vm0, %v2618_v5 }
 0x142   : > { %v1029_v16 = vpop.f32.mrb[0].mxu0 }
 0x143   : > { %v1030_v18 = vadd.f32 %v2185_v12, %v1029_v16  ;;  %v2280_v19 = vpop.f32.mrb[1].mxu0 }
 0x144   : > { %v1096_v13 = vpop.f32.mrb[0].mxu1  ;;  %v1032_v22 = vpop.f32.mrb[2].mxu0 }
 0x145   : > { %v1097_v14 = vadd.f32 %v2189_v11, %v1096_v13  ;;  %v2288_v15 = vpop.f32.mrb[1].mxu1  ;;  %v2281_v23 = vpop.f32.mrb[3].mxu0  ;;  %v1035_v25 = vmul.f32 0.17677669, %v1030_v18 }
 0x146   : > { %v1099_v17 = vpop.f32.mrb[2].mxu1 }
 0x147   : > { %v1166_v20 = vpack.c.bf16 %v1097_v14, %v1097_v14  ;;  %v2289_v21 = vpop.f32.mrb[3].mxu1  ;;  %v1165_v26 = vpack.c.bf16 %v1035_v25, %v1035_v25  ;;  %v1386_v25 = vld [vmem:[%s3168_s23] sm:$0xff] }
 0x149   : > { %v1173_v24 = vsel %vm991_vm1, %v1166_v20, 0 }
 0x14a   : > { %2299 = vmatpush3.bf16.xpose.msra.mxu1 %v1173_v24  ;;  %v1159_v49 = vpop.f32.mrb[4].mxu0 }
 0x14b   : > { %2310 = vmatprep.subr.bf16.mxu1 %v2618_v5  ;;  %v2296_v50 = vpop.f32.mrb[5].mxu0  ;;  %v1160_v54 = vadd.f32 %v2193_v52, %v1159_v49 }
 0x14c   : > { %v1162_v51 = vpop.f32.mrb[6].mxu0 }
 0x14d   : > { %v2297_v53 = vpop.f32.mrb[7].mxu0  ;;  %v1237_v55 = vpack.c.bf16 %v1160_v54, %v1160_v54  ;;  %v2491_v51 = vld [vmem:[%s3161_s16] sm:$0xff]  }
 0x14f   : > { %v1243_v56 = vsel %vm1241_vm5, %v1237_v55, 0  ;;  %v2492_v55 = vld [vmem:[%s3161_s16 + $0x8] sm:$0xff]  }
 0x150   : > { %2305 = vmatpush3.bf16.msra.mxu0 %v1243_v56 }
 0x151   : > { %2301 = vmatmul.mubr.msk.bf16.vlgmr.msra.gmra.mrb[4].mxu1 %vm991_vm1, %v1165_v26  ;;  %v1387_v26 = vld [vmem:[%s3168_s23 + $0x8] sm:$0xff]  ;;  %2373 = vmatprep.subr.bf16.mxu0 %v2621_v30 }
 0x152   : > { %2314 = vmatprep.mubr.msk.bf16.mxu1 %vm2619_vm0, %v2618_v5  ;;  %2311 = vmatpush3.bf16.msra.mxu1 %v2489_v57  ;;  %v2374_v27 = vpack.c.bf16 %v1387_v26, %v1386_v25 }
 0x153   : > { %2312 = vmatprep.subr.bf16.mxu1 %v2618_v5 }
 0x156   : > { %2313 = vmatpush3.bf16.msra.mxu1 %v2490_v62  ;;  %v2495_v62 = vld [vmem:[%s3163_s18 + $0x10] sm:$0xff]  }
 0x157   : > { %2379 = vmatprep.subr.bf16.mxu1 %v2621_v30 }
 0x224   : > { %v1209_v37 = vpop.f32.mrb[4].mxu1 }
 0x225   : > { %v1210_v38 = vadd.f32 %v1209_v37, %v1168_v36  ;;  %v2302_v39 = vpop.f32.mrb[5].mxu1  ;;  %v1385_v36 = vld [vmem:[%s3167_s22 + $0x18] sm:$0xff] }
 0x226   : > { %v1212_v40 = vpop.f32.mrb[6].mxu1  ;;  %v2383_v37 = vpack.c.bf16 %v1385_v36, %v1384_v35 }
 0x227   : > { %v2303_v41 = vpop.f32.mrb[7].mxu1  ;;  %v1223_v42 = vsel %vm1222_vm3, %v1210_v38, -1e+30  ;;  %v2493_v38 = vld [vmem:[%s3163_s18] sm:$0xff]  }
 0x228   : > { %v1225_v43 = vsel %vm1224_vm4, %v1223_v42, -inf }
 0x229   : > { %1226 = vmax.xlane.f32.xlu0 %v1225_v43 }
 0x2b6   : > { %v1227_v44 = vpop.xlane.xlu0 %1226 }
 0x2b7   : > { %v1228_v45 = vsub.f32 %v1223_v42, %v1227_v44 }
 0x2b9   : > { %v1229_v46 = vmul.f32 1.442695, %v1228_v45 }
 0x2bb   : > { %2497 = vpow2.f32 %v1229_v46  ;;  %v2203_v46 = vld [vmem:[%s3159_s14] ss:$0 sm:$0xff] }
 0x2c5   : > { %v2498_v47 = vpop.eup %2497 }
 0x2c6   : > { %v1231_v48 = vsel %vm1224_vm4, %v2498_v47, 0.0 }
 0x2c7   : > { %1232 = vadd.xlane.f32.xlu0 %v1231_v48  ;;  %v2204_v48 = vld [vmem:[%s3160_s15] ss:$0 sm:$0xff] }
 0x354   : > { %v1233_v58 = vpop.xlane.xlu0 %1232 }
 0x355   : > { %2499 = vrcp.f32 %v1233_v58 }
 0x35f   : > { %v2500_v59 = vpop.eup %2499 }
 0x360   : > { %v2972_v60 = vmul.f32 %v2500_v59, %v2498_v47  ;;  %v2494_v59 = vld [vmem:[%s3163_s18 + $0x8] sm:$0xff]  }
 0x362   : > { %v1236_v61 = vpack.c.bf16 %v2972_v60, %v2972_v60 }
 0x364   : > { %2307 = vmatmul.mubr.msk.bf16.vlgmr.msra.gmra.mrb[8].mxu0 %vm1224_vm4, %v1236_v61 }
 0x365   : > { %2326 = vmatprep.mubr.msk.f32.mxu0 %vm2619_vm0, %v2618_v5  ;;  %2375 = vmatpush3.bf16.msra.mxu0 %v2374_v27 }
 0x366   : > { %2376 = vmatprep.subr.bf16.mxu0 %v2621_v30 }
 0x369   : > { %2378 = vmatpush3.bf16.msra.mxu0 %v2377_v34 }
 0x36a   : > { %2340 = vmatprep.subr.bf16.mxu0 %v2618_v5 }
 0x437   : > { %v1279_v63 = vpop.f32.mrb[8].mxu0 }
 0x438   : > { %v1285_v0 = vpack.c.bf16 %v1279_v63, %v1279_v63  ;;  %v2308_v1 = vpop.f32.mrb[9].mxu0  ;;  %v2496_v63 = vld [vmem:[%s3163_s18 + $0x18] sm:$0xff]  }
 0x439   : > { %v1282_v2 = vpop.f32.mrb[10].mxu0  ;;  %v2207_v1 = vld [vmem:[%s3234_s8] ss:$0 sm:$0xff] }
 0x43a   : > { %v2309_v3 = vpop.f32.mrb[11].mxu0  ;;  %2315 = vmatmul.mubr.msk.bf16.vlgmr.msra.gmra.mrb[8].mxu1 %vm991_vm1, %v1285_v0 }
 0x43b   : > { %2337 = vmatprep.mubr.msk.f32.mxu1 %vm2619_vm0, %v2618_v5  ;;  %2381 = vmatpush3.bf16.msra.mxu1 %v2380_v31 }
 0x43c   : > { %2382 = vmatprep.subr.bf16.mxu1 %v2621_v30 }
 0x43f   : > { %2384 = vmatpush3.bf16.msra.mxu1 %v2383_v37 }
 0x440   : > { %2348 = vmatprep.subr.bf16.mxu1 %v2618_v5 }
 0x442   : > { %2338 = vmatmul.mubr.msk.f32.vlgmr.msra.gmra.mrb[12].mxu1 %vm991_vm1, %v967_v6 }
 0x443   : > { %2356 = vmatprep.mubr.msk.bf16.mxu1 %vm2619_vm0, %v2618_v5  ;;  %2349 = vmatpush3.bf16.msra.mxu1 %v2493_v38 }
 0x444   : > { %2350 = vmatprep.subr.bf16.mxu1 %v2618_v5 }
 0x447   : > { %2351 = vmatpush3.bf16.msra.mxu1 %v2494_v59 }
 0x448   : > { %2352 = vmatprep.subr.bf16.mxu1 %v2618_v5 }
 0x44b   : > { %2353 = vmatpush3.bf16.msra.mxu1 %v2495_v62 }
 0x44c   : > { %2354 = vmatprep.subr.bf16.mxu1 %v2618_v5 }
 0x44f   : > { %2355 = vmatpush3.bf16.msra.mxu1 %v2496_v63 }
 0x50d   : > { %v1346_v7 = vpop.f32.mrb[8].mxu1 }
 0x50e   : > { %v1347_v8 = vadd.f32 %v2199_v4, %v1346_v7  ;;  %v2316_v9 = vpop.f32.mrb[9].mxu1  ;;  %v2210_v7 = vld [vmem:[%s3235_s29] ss:$0 sm:$0xff] }
 0x50f   : > { %v1349_v11 = vpop.f32.mrb[10].mxu1 }
 0x510   : > { %v2317_v12 = vpop.f32.mrb[11].mxu1  ;;  %v1354_v13 = vsel %vm991_vm1, %v1347_v8, 0.0  ;;  %v1565_v14 = vadd.f32 %v1347_v8, %v967_v6 }
 0x511   : > { %1355 = vadd.xlane.f32.xlu1 %v1354_v13 }
 0x512   : > { %v1568_v15 = vsel %vm991_vm1, %v1565_v14, 0.0 }
 0x515   : > { %1569 = vadd.xlane.f32.xlu1 %v1568_v15  ;;  %v1532_v58 = vpop.f32.mrb[12].mxu1 }
 0x516   : > { %v2339_v61 = vpop.f32.mrb[13].mxu1 }
 0x59e   : > { %v1356_v16 = vpop.xlane.xlu1 %1355 }
 0x59f   : > { %v1358_v17 = vmul.f32 0.03125, %v1356_v16 }
 0x5a1   : > { %v1359_v18 = vsub.f32 %v1347_v8, %v1358_v17 }
 0x5a2   : > { %v1570_v19 = vpop.xlane.xlu1 %1569 }
 0x5a3   : > { %v1571_v20 = vmul.f32 0.03125, %v1570_v19  ;;  %v1360_v21 = vmul.f32 %v1359_v18, %v1359_v18 }
 0x5a5   : > { %v1572_v22 = vsub.f32 %v1565_v14, %v1571_v20  ;;  %v1361_v10 = vsel %vm991_vm1, %v1360_v21, 0.0  ;;  %v2622_v21 = vmov 1  }
 0x5a6   : > { %1362 = vadd.xlane.f32.xlu0 %v1361_v10  ;;  %v2214_v10 = vld [vmem:[%s3236_s9] ss:$0 sm:$0xff] }
 0x5a7   : > { %v1573_v23 = vmul.f32 %v1572_v22, %v1572_v22  ;;  %2482 = vset.pattern.permute.xlu0 %v2622_v21 }
 0x5a9   : > { %v1574_v24 = vsel %vm991_vm1, %v1573_v23, 0.0 }
 0x5aa   : > { %1575 = vadd.xlane.f32.xlu1 %v1574_v24 }
 0x633   : > { %v1363_v39 = vpop.xlane.xlu0 %1362 }
 0x634   : > { %v1364_v40 = vmul.f32 0.03125, %v1363_v39 }
 0x636   : > { %v1365_v41 = vadd.f32 1e-05, %v1364_v40 }
 0x637   : > { %v1576_v42 = vpop.xlane.xlu1 %1575 }
 0x638   : > { %2501 = vrsqrt.f32 %v1365_v41  ;;  %v1577_v43 = vmul.f32 0.03125, %v1576_v42  ;;  %v2220_v42 = vld [vmem:[%s3237_s2] ss:$0 sm:$0xff] }
 0x63a   : > { %v1578_v44 = vadd.f32 1e-05, %v1577_v43 }
 0x63c   : > { %2503 = vrsqrt.f32 %v1578_v44  ;;  %v2221_v44 = vld [vmem:[%s3238_s0] ss:$0 sm:$0xff] }
 0x642   : > { %v2502_v45 = vpop.eup %2501 }
 0x643   : > { %v1367_v47 = vmul.f32 %v2502_v45, %v1359_v18 }
 0x645   : > { %v1374_v49 = vmul.f32 %v2203_v46, %v1367_v47 }
 0x646   : > { %v2504_v50 = vpop.eup %2503 }
 0x647   : > { %v1580_v52 = vmul.f32 %v2504_v50, %v1572_v22  ;;  %v1381_v53 = vadd.f32 %v2204_v48, %v1374_v49  ;;  %v2623_v22 = vmov -1e+30  }
 0x648   : > { %1777 = vst.msk [vmem:[#allocation5] sm:$0xff] %vm1556_vm8, %v2623_v22 }
 0x649   : > { %2327 = vmatmul.mubr.msk.f32.vlgmr.msra.gmra.mrb[12].mxu0 %vm991_vm1, %v1381_v53  ;;  %v1587_v54 = vmul.f32 %v2203_v46, %v1580_v52 }
 0x64a   : > { %2341 = vmatpush3.bf16.msra.mxu0 %v2491_v51  ;;  %2344 = vmatprep.mubr.msk.bf16.mxu0 %vm2619_vm0, %v2618_v5 }
 0x64b   : > { %2342 = vmatprep.subr.bf16.mxu0 %v2618_v5  ;;  %v1594_v56 = vadd.f32 %v2204_v48, %v1587_v54 }
 0x64d   : > { %v1595_v57 = vpack.c.bf16 %v1594_v56, %v1594_v56 }
 0x64e   : > { %2343 = vmatpush3.bf16.msra.mxu0 %v2492_v55 }
 0x651   : > { %2345 = vmatmul.mubr.msk.bf16.vlgmr.msra.gmra.mrb[16].mxu0 %vm991_vm1, %v1595_v57 }
 0x71c   : > { %v1459_v0 = vpop.f32.mrb[12].mxu0 }
 0x71d   : > { %v1533_v2 = vadd.f32 %v1532_v58, %v1459_v0  ;;  %v2328_v3 = vpop.f32.mrb[13].mxu0 }
 0x71f   : > { %v1543_v4 = vadd.f32 %v2207_v1, %v1533_v2 }
 0x721   : > { %v1545_v6 = vsel %vm1544_vm6, %v1543_v4, -inf }
 0x722   : > { %1546 = vmax.xlane.f32.xlu0 %v1545_v6 }
 0x724   : > { %v1656_v8 = vpop.f32.mrb[16].mxu0 }
 0x725   : > { %v1657_v9 = vadd.f32 %v2210_v7, %v1656_v8  ;;  %v2346_v11 = vpop.f32.mrb[17].mxu0 }
 0x726   : > { %v1659_v12 = vpop.f32.mrb[18].mxu0 }
 0x727   : > { %v1662_v13 = vmax.f32 %v1657_v9, 0.0  ;;  %v2347_v14 = vpop.f32.mrb[19].mxu0 }
 0x729   : > { %v1663_v15 = vpack.c.bf16 %v1662_v13, %v1662_v13 }
 0x72b   : > { %2357 = vmatmul.mubr.msk.bf16.vlgmr.msra.gmra.mrb[16].mxu1 %vm1703_vm7, %v1663_v15 }
 0x7af   : > { %v1547_v16 = vpop.xlane.xlu0 %1546 }
 0x7b0   : > { %v1548_v17 = vsub.f32 %v1543_v4, %v1547_v16 }
 0x7b2   : > { %v1549_v18 = vmul.f32 1.442695, %v1548_v17 }
 0x7b4   : > { %2505 = vpow2.f32 %v1549_v18 }
 0x7be   : > { %v2506_v19 = vpop.eup %2505 }
 0x7bf   : > { %v1551_v20 = vsel %vm1544_vm6, %v2506_v19, 0.0 }
 0x7c0   : > { %1552 = vadd.xlane.f32.xlu0 %v1551_v20 }
 0x7fe   : > { %v1741_v23 = vpop.f32.mrb[16].mxu1 }
 0x7ff   : > { %v1742_v24 = vadd.f32 %v2214_v10, %v1741_v23  ;;  %v2358_v25 = vpop.f32.mrb[17].mxu1 }
 0x800   : > { %v1744_v26 = vpop.f32.mrb[18].mxu1 }
 0x801   : > { %v2359_v27 = vpop.f32.mrb[19].mxu1  ;;  %v1749_v28 = vsel %vm991_vm1, %v1742_v24, 0.0 }
 0x802   : > { %1750 = vadd.xlane.f32.xlu1 %v1749_v28 }
 0x84d   : > { %v1553_v29 = vpop.xlane.xlu0 %1552 }
 0x84e   : > { %2507 = vrcp.f32 %v1553_v29 }
 0x858   : > { %v2508_v30 = vpop.eup %2507 }
 0x859   : > { %v1555_v31 = vmul.f32 %v2508_v30, %v2506_v19 }
 0x85b   : > { %1560 = vperm.xlu0 %2482, %v1555_v31   ;;  %1557 = vst.msk [vmem:[#allocation4] sm:$0xff] %vm1556_vm8, %v1555_v31 }
 0x88f   : > { %v1751_v5 = vpop.xlane.xlu1 %1750 }
 0x890   : > { %v1752_v32 = vmul.f32 0.03125, %v1751_v5 }
 0x892   : > { %v1753_v33 = vsub.f32 %v1742_v24, %v1752_v32 }
 0x894   : > { %v1754_v34 = vmul.f32 %v1753_v33, %v1753_v33 }
 0x896   : > { %v1755_v35 = vsel %vm991_vm1, %v1754_v34, 0.0 }
 0x897   : > { %1756 = vadd.xlane.f32.xlu1 %v1755_v35 }
 0x8da   : > { %v1561_v36 = vpop.permute.xlu0 %1560 }
 0x8db   : > { %v1563_v37 = vmul.f32 %v1561_v36, %v2972_v60 }
 0x8dd   : > { %1564 = vst.msk [vmem:[#allocation3] sm:$0xff] %vm1224_vm4, %v1563_v37 }
 0x924   : > { %v1757_v38 = vpop.xlane.xlu1 %1756 }
 0x925   : > { %v1758_v39 = vmul.f32 0.03125, %v1757_v38 }
 0x927   : > { %v1759_v40 = vadd.f32 1e-05, %v1758_v39 }
 0x929   : > { %2509 = vrsqrt.f32 %v1759_v40 }
 0x933   : > { %v2510_v41 = vpop.eup %2509 }
 0x934   : > { %v1761_v43 = vmul.f32 %v2510_v41, %v1753_v33 }
 0x936   : > { %v1768_v45 = vmul.f32 %v2220_v42, %v1761_v43 }
 0x938   : > { %v1775_v46 = vadd.f32 %v2221_v44, %v1768_v45 }
 0x93a   : > { %1776 = vst.msk [vmem:[#allocation2] sm:$0xff] %vm991_vm1, %v1775_v46 }
 0x93b PF: > { %s3239_s21 = sld [smem:[#allocation24_spill]]  ;;  %s3241_s17 = sld [smem:[#allocation14_spill]]  ;;  %v2624_v47 = vmov 0.0   ;;  %vm2625_vm9 = vmmov 0   ;;  %vm1799_vm10 = vcmask 261120   ;;  %v1843_v51 = vlaneseq }
 0x93c   : > { %2360 = vmatprep.subr.bf16.mxu0 %v2624_v47  ;;  %2364 = vmatprep.mubr.msk.bf16.mxu0 %vm2625_vm9, %v2624_v47  ;;  %s3243_s28 = sld [smem:[#allocation15_spill]] }
 0x93d   : > { %v1844_v52 = vand.u32 127, %v1843_v51 }
 0x941   : > { %s3240_s8 = scalar_lea.vmem [#allocation11], %s3239_s21  ;;  %v1781_v49 = vld [vmem:[#allocation2] sm:$0xff]  ;;  %s2225_s29 = sshll.u32 %s3241_s17, 7 }
 0x942   : > { %v2511_v60 = vld [vmem:[%s3240_s8] sm:$0xff]   ;;  %s3242_s25 = smov %s3240_s8  ;;  %v1782_v50 = vpack.c.bf16 %v1781_v49, %v1781_v49  ;;  %v1846_v53 = vstv %s2225_s29  ;;  %p2226_p12 = scmp.ne.s32.totalorder %s3243_s28, 0 }
 0x943   : > { %2361 = vmatpush3.bf16.msra.mxu0 %v2511_v60  ;;  %v2512_v48 = vld [vmem:[%s3242_s25 + $0x8] sm:$0xff]   ;;  %v3089_v54 = vadd.s32 %v1846_v53, %v1844_v52  ;;  %v2626_v61 = vmov (!%p2226_p12), 0   ;;  %v1853_v62 = vld [vmem:[#allocation5] sm:$0xff] (!%p2226_p12)  ;;  %vm1873_vm12 = vcmask (!%p2226_p12), 7168   ;;  %v1857_v9 = vld [vmem:[#allocation6] sm:$0xff] (!%p2226_p12) }
 0x944   : > { %2362 = vmatprep.subr.bf16.mxu0 %v2624_v47  ;;  %2513 = vset.pattern.permute.xlu0 (!%p2226_p12), %v2626_v61 }
 0x945   : > { %vm1848_vm11 = vcmp.lt.s32.totalorder %v3089_v54, 200 }
 0x947   : > { %2363 = vmatpush3.bf16.msra.mxu0 %v2512_v48 }
 0x94a   : > { %2365 = vmatmul.mubr.msk.bf16.vlgmr.msra.gmra.mrb[0].mxu0 %vm1799_vm10, %v1782_v50 }
 0xa1a   : > { %1852 = sbr.rel (%p2226_p12) target bundleno = 3023 (0xbcf), region = 177 }
 0xa1d   : > { %v1837_v55 = vpop.f32.mrb[0].mxu0 }
 0xa1e   : > { %v1849_v56 = vsel %vm1848_vm11, %v1837_v55, -1e+30  ;;  %v2366_v57 = vpop.f32.mrb[1].mxu0 }
 0xa1f   : > { %v1840_v58 = vpop.f32.mrb[2].mxu0  ;;  %1854 = vmax.xlane.f32.xlu0 (!%p2226_p12), %v1849_v56 }
 0xa20   : > { %v2367_v59 = vpop.f32.mrb[3].mxu0 }
 0xaac   : > { %v1855_v63 = vpop.xlane.xlu0 %1854 }
 0xaad   : > { %v1856_v0 = vmax.f32 %v1853_v62, %v1855_v63 }
 0xaaf   : > { %v1858_v1 = vsub.f32 %v1853_v62, %v1856_v0  ;;  %1875 = vst.msk [vmem:[#allocation5] sm:$0xff] %vm1873_vm12, %v1856_v0  ;;  %1864 = vperm.xlu0 %2513, %v1856_v0  }
 0xab1   : > { %v1859_v7 = vmul.f32 1.442695, %v1858_v1 }
 0xb2e   : > { %v1865_v2 = vpop.permute.xlu0 %1864 }
 0xb2f   : > { %v1867_v3 = vsub.f32 %v1849_v56, %v1865_v2 }
 0xb31   : > { %v1868_v4 = vmul.f32 1.442695, %v1867_v3 }
 0xb33   : > { %2514 = vpow2.f32 %v1868_v4 }
 0xb34   : > { %2516 = vpow2.f32 %v1859_v7 }
 0xb3d   : > { %v2515_v6 = vpop.eup %2514 }
 0xb3e   : > { %1870 = vadd.xlane.f32.xlu1 %v2515_v6  ;;  %v2517_v8 = vpop.eup %2516 }
 0xb3f   : > { %v1861_v11 = vmul.f32 %v2517_v8, %v1857_v9 }
 0xbcb   : > { %v1871_v12 = vpop.xlane.xlu1 %1870 }
 0xbcc   : > { %v1872_v13 = vadd.f32 %v1871_v12, %v1861_v11 }
 0xbce   : > { %1874 = vst.msk [vmem:[#allocation6] sm:$0xff] %vm1873_vm12, %v1872_v13 }
 0xbcf PF: > { %s3244_s7 = sld [smem:[#allocation15_spill]] }
 0xbd5   : > { %p2227_p13 = scmp.ne.s32.totalorder %s3244_s7, 1 }
 0xbd6   : > { %v1905_v14 = vld [vmem:[%s949_s20] sm:$0xff] (!%p2227_p13)  ;;  %v2627_v15 = vmov (!%p2227_p13), 0   ;;  %v2628_v17 = vmov (!%p2227_p13), 0.0   ;;  %v1880_v18 = vld [vmem:[#allocation5] sm:$0xff] (!%p2227_p13)  ;;  %vm2629_vm13 = vmmov (!%p2227_p13), 0   ;;  %v1898_v21 = vld [vmem:[#allocation4] sm:$0xff] (!%p2227_p13) }
 0xbd7   : > { %1879 = sbr.rel (%p2227_p13) target bundleno = 3661 (0xe4d), region = 181  ;;  %2518 = vset.pattern.permute.xlu0 (!%p2227_p13), %v2627_v15  ;;  %2519 = vset.pattern.permute.xlu1 (!%p2227_p13), %v2627_v15  ;;  %v1889_v16 = vld [vmem:[#allocation6] sm:$0xff] (!%p2227_p13)  ;;  %v1912_v10 = vld [vmem:[#allocation3] sm:$0xff] (!%p2227_p13)  ;;  %vm1913_vm14 = vcmask (!%p2227_p13), 64512   ;;  %v2630_v23 = vmov (!%p2227_p13), 1.0   ;;  %v2005_v41 = vld [vmem:[#allocation8] sm:$0xff] (!%p2227_p13) }
 0xbd8   : > { %1907 = vperm.xlu0 (!%p2227_p13), %2518, %v1905_v14   ;;  %2520 = vrcp.f32 (!%p2227_p13), %v1889_v16  ;;  %2368 = vmatprep.subr.mxu0 (!%p2227_p13), %v2628_v17  ;;  %v1991_v19 = vld [vmem:[%s953_s1] sm:$0xff] (!%p2227_p13)  ;;  %v1998_v42 = vld [vmem:[#allocation7] sm:$0xff] (!%p2227_p13)  ;;  %vm2003_vm1 = vcmask (!%p2227_p13), 7168   ;;  %s3247_s20 = sld [smem:[#allocation14_spill]] (!%p2227_p13) }
 0xbd9   : > { %2370 = vmatprep.mubr.msk.f32.mxu0 (!%p2227_p13), %vm2629_vm13, %v2628_v17 }
 0xbdc   : > { %1883 = vperm.xlu0 (!%p2227_p13), %2518, %v1880_v18  }
 0xbde   : > { %p2232_p0 = scmp.ne.s32.totalorder %s3247_s20, 1 }
 0xbdf   : > { %s2631_s1 = smov (!%p2232_p0), 1   ;;  %vm2022_vm2 = vcmask (!%p2232_p0), 15360  }
 0xbe0   : > { %1993 = vperm.xlu0 %2518, %v1991_v19  }
 0xbe2   : > { %v2521_v20 = vpop.eup %2520 }
 0xbe3   : > { %1894 = vperm.xlu1 %2519, %v2521_v20  }
 0xbe7   : > { %1901 = vperm.xlu1 %2519, %v1898_v21  }
 0xc57   : > { %v1908_v22 = vpop.permute.xlu0 %1907 }
 0xc58   : > { %vm1909_vm15 = vcmp.eq.s32.totalorder %v1908_v22, %v3089_v54 }
 0xc59   : > { %2369 = vmatpush3.msk.msra.mxu0 %vm1909_vm15, %v2630_v23 }
 0xc5a   : > { %2371 = vmatmul.mubr.msk.f32.vlgmr.msra.gmra.mrb[0].mxu0 %vm1913_vm14, %v1912_v10 }
 0xc5b   : > { %v1884_v24 = vpop.permute.xlu0 %1883 }
 0xc5c   : > { %v1886_v25 = vsub.f32 %v1849_v56, %v1884_v24 }
 0xc5e   : > { %v1887_v26 = vmul.f32 1.442695, %v1886_v25 }
 0xc5f   : > { %v1994_v35 = vpop.permute.xlu0 %1993 }
 0xc60   : > { %2522 = vpow2.f32 %v1887_v26  ;;  %vm1995_vm0 = vcmp.eq.s32.totalorder %v1994_v35, %v3089_v54 }
 0xc61   : > { %v2231_v38 = vsel %vm1995_vm0, 1.0, %v2628_v17 }
 0xc62   : > { %v1895_v27 = vpop.permute.xlu1 %1894 }
 0xc66   : > { %v1902_v30 = vpop.permute.xlu1 %1901 }
 0xc6a   : > { %v2523_v28 = vpop.eup %2522 }
 0xc6b   : > { %v1897_v29 = vmul.f32 %v2523_v28, %v1895_v27 }
 0xc6d   : > { %v1904_v31 = vmul.f32 %v1902_v30, %v1897_v29 }
 0xd2d   : > { %v1983_v5 = vpop.f32.mrb[0].mxu0 }
 0xd2e   : > { %v1987_v32 = vadd.f32 %v1983_v5, %v1904_v31  ;;  %v2372_v33 = vpop.f32.mrb[1].mxu0 }
 0xd30   : > { %v1988_v34 = vadd.f32 1e-12, %v1987_v32 }
 0xd32   : > { %2524 = vlog2.f32 %v1988_v34 }
 0xd3c   : > { %v2525_v36 = vpop.eup %2524 }
 0xd3d   : > { %v1990_v37 = vmul.f32 0.6931472, %v2525_v36 }
 0xd3f   : > { %v2006_v39 = vsel %vm1848_vm11, %v1990_v37, 0.0  ;;  %v1999_v40 = vmul.f32 %v2231_v38, %v1990_v37 }
 0xd40   : > { %2007 = vadd.xlane.f32.xlu0 %v2006_v39 }
 0xd41   : > { %2000 = vadd.xlane.f32.xlu1 %v1999_v40 }
 0xdcb   : > { %2014 = sbr.rel (%p2232_p0) target bundleno = 3661 (0xe4d), region = 185 }
 0xdcd   : > { %v2008_v43 = vpop.xlane.xlu0 %2007 }
 0xdce   : > { %v2009_v44 = vadd.f32 %v2008_v43, %v2005_v41  ;;  %v2001_v45 = vpop.xlane.xlu1 %2000 }
 0xdcf   : > { %v2002_v46 = vadd.f32 %v2001_v45, %v1998_v42 }
 0xdd0   : > { %2010 = vst.msk [vmem:[#allocation8] sm:$0xff] %vm2003_vm1, %v2009_v44 }
 0xdd1   : > { %2004 = vst.msk [vmem:[#allocation7] sm:$0xff] %vm2003_vm1, %v2002_v46 }
 0xdd7   : > { %v2016_v60 = vld [vmem:[#allocation8] sm:$0xff] }
 0xdd8   : > { %2018 = vrot.lane.b32.xlu0 %v2016_v60, %s2631_s1  ;;  %v2015_v47 = vld [vmem:[#allocation7] sm:$0xff] }
 0xe4a   : > { %v2019_v48 = vpop.permute.xlu0 %2018 }
 0xe4b   : > { %v2021_v49 = vsel %vm2003_vm1, %v2015_v47, %v2019_v48 }
 0xe4c   : > { %2023 = vst.msk [vmem:[%s957_s5] sm:$0xff] %vm2022_vm2, %v2021_v49 }
 0xe4d PF: > { %s3248_s8 = sld [smem:[#allocation19_spill]]  ;;  %s3249_s27 = sld [smem:[#allocation13_spill]] }
 0xe4e   : > { %s3250_s3 = sld [smem:[#allocation22_spill]]  ;;  %s3251_s7 = sld [smem:[#allocation16_spill]] }
 0xe4f   : > { %s3252_s28 = sld [smem:[#allocation17_spill]]  ;;  %s3254_s4 = sld [smem:[#allocation20_spill]] }
 0xe50   : > { %s3255_s29 = sld [smem:[#allocation21_spill]]  ;;  %s3256_s0 = sld [smem:[#allocation23_spill]] }
 0xe53   : > { %s37_s9 = sadd.s32 1, %s3248_s8   ;;  %s3253_s8 = sld [smem:[#allocation18_spill]] }
 0xe54   : > { %p34_p1 = scmp.ge.s32.totalorder %s37_s9, 10  }
 0xe56   :  { %36 = sbr.rel (!%p34_p1) target bundleno = 23 (0x17), region = 236 }
 0xe5d   :  { %2043 = vsyncpa [#allocation10], 1 }
 0xe5e   :  { %2045 = vsyncpa [#allocation10 + $0x1], 1 }

</bundles_post_ra>
